<compile_context>
chip_gen: v6e
topology: v6e:2x2x1
jax: 0.10.0
libtpu: 0.0.40
codegen_flags: <defaults>
</compile_context>

<pallas_src>
import functools

import numpy as np

import jax
import jax.numpy as jnp
from jax.experimental import pallas as pl
from jax.experimental.pallas import tpu as pltpu

HIDDEN = 32
NUM_HEADS = 4
ATT_SIZE = HIDDEN // NUM_HEADS
SCALE = ATT_SIZE ** (-0.5)
LEAKY_SLOPE = 0.02          # nn.LeakyReLU(0.02) in the original module


def _leaky_relu(x):
    return jnp.where(x >= 0, x, LEAKY_SLOPE * x)


# --------------------------------------------------------------------------
# Fused kernel (single grid step): edge scores -> graph scatter -> graph-biased
# MHA -> path embedding, with the batch folded into the sublane axis.
# --------------------------------------------------------------------------
def fused_kernel(x_ref, g_ref, mix_ref, pew_ref, scat_ref,
                 wmain_ref, wqkvo_ref, wsc_ref, bias_ref, o_ref,
                 *, batch, nodes, pairs, num_heads, att_size, scale):
    B, N, P = batch, nodes, pairs
    H, A = num_heads, att_size
    D = x_ref.shape[1]
    f32 = jnp.float32

    x2d = x_ref[...]                                    # (B*N, D)
    wmain = wmain_ref[...]                              # (2D, 3D)
    w_vs, w_atom = wmain[:, :2 * D], wmain[:, 2 * D:]   # blockdiag(w_var,w_sym), w_atom
    wqkvo = wqkvo_ref[...]                              # (D, 4D) = [w_q|w_k|w_v|w_o]
    wsc = wsc_ref[...]                                  # (2D, 2) = [w_score | w_cross]
    bp = bias_ref[...]                                  # (6, 3D) packed biases
    b_vs, b_qkv = bp[0:1, :2 * D], bp[1:2, :3 * D]
    b_atom, b_o = bp[2:3, :D], bp[3:4, :D]
    b_score, b_cross = bp[4:5, 0:1], bp[5:6, 0:1]

    # ---- 1. per-node / per-pair edge scores (batched over all b, one push each) --
    mix = mix_ref[...]                                  # (B*N + B*P, B*N)
    proj = jnp.dot(mix, x2d, preferred_element_type=f32)        # (B*N + B*P, D)
    var_in, pair_in = proj[:B * N], proj[B * N:]

    feat = jnp.tanh(jnp.dot(jnp.concatenate([var_in, x2d], axis=1), w_vs,
                            preferred_element_type=f32) + b_vs)  # (B*N, 2D)
    atom_score = _leaky_relu(
        jnp.dot(feat, wsc[:, 0:1], preferred_element_type=f32) + b_score)   # (B*N, 1)
    pair_score = _leaky_relu(
        jnp.dot(pair_in, wsc[:D, 1:2], preferred_element_type=f32) + b_cross)  # (B*P,1)

    # ---- 2. fused Q/K/V projection (single MXU push) ----------------------------
    qkv = jnp.dot(x2d, wqkvo[:, :3 * D], preferred_element_type=f32) + b_qkv
    q_all = qkv[:, :D] * scale
    k_all = qkv[:, D:2 * D]
    v_all = qkv[:, 2 * D:]

    # ---- 3. per-batch graph scatter + bias + raw attention scores ---------------
    g2d = g_ref[...]                                    # (2*B*N, N): [ag_b ; vg_b]...
    scat = scat_ref[...]                                # (B*(N+P), N, N) one-hot tables
    score_blocks = []
    for b in range(B):
        ag = g2d[2 * b * N:(2 * b + 1) * N]             # masked atom graph  (N, N)
        vg = g2d[(2 * b + 1) * N:(2 * b + 2) * N]       # masked variable graph
        a_sc = atom_score[b * N:(b + 1) * N]            # (N, 1)
        p_sc = pair_score[b * P:(b + 1) * P]            # (P, 1)
        ascat_b = scat[b * (N + P):b * (N + P) + N]     # (N, N, N)
        pscat_b = scat[b * (N + P) + N:(b + 1) * (N + P)]   # (P, N, N)
        ag = ag + jnp.sum(a_sc[:, :, None] * ascat_b, axis=0)
        vg = vg + jnp.sum(p_sc[:, :, None] * pscat_b, axis=0)
        # 0.2*ag + 0.8*ag@ag + vg@vg in ONE push: [0.8*ag | vg] @ [ag ; vg]
        bias_b = 0.2 * ag + jnp.dot(
            jnp.concatenate([0.8 * ag, vg], axis=1),
            jnp.concatenate([ag, vg], axis=0),
            preferred_element_type=f32)                 # (N, N), shared by all heads

        q_b = q_all[b * N:(b + 1) * N]                  # (N, D)
        kT_b = k_all[b * N:(b + 1) * N].T               # (D, N)  one transpose / batch
        for h in range(H):
            sl = slice(h * A, (h + 1) * A)
            score_blocks.append(
                jnp.dot(q_b[:, sl], kT_b[sl, :], preferred_element_type=f32) + bias_b)

    # ---- 4. one shared softmax over all (batch, head) blocks --------------------
    s_all = jnp.concatenate(score_blocks, axis=0)       # (B*H*N, N) sublane-stacked
    s_all = s_all - jnp.max(s_all, axis=-1, keepdims=True)
    e = jnp.exp(s_all)
    p_all = e * pl.reciprocal(jnp.sum(e, axis=-1, keepdims=True), approx=True)
    # TODO(synk): dropout(0.1) on p_all skipped (eval-mode identity).

    # ---- 5. context + ONE fused output projection --------------------------------
    ctx_rows = []
    for b in range(B):
        v_b = v_all[b * N:(b + 1) * N]                  # (N, D)
        heads = []
        for h in range(H):
            blk = b * H + h
            p_bh = p_all[blk * N:(blk + 1) * N]         # (N, N)
            heads.append(jnp.dot(p_bh, v_b[:, h * A:(h + 1) * A],
                                 preferred_element_type=f32))   # (N, A)
        ctx_rows.append(jnp.concatenate(heads, axis=1))          # (N, D)
    ctx_all = jnp.concatenate(ctx_rows, axis=0)         # (B*N, D)
    x_new = jnp.dot(ctx_all, wqkvo[:, 3 * D:], preferred_element_type=f32) + b_o

    # ---- 6. path embedding (weighted mean over predicate atoms) ------------------
    var2 = jnp.dot(mix[:B * N, :], x_new, preferred_element_type=f32)     # (B*N, D)
    atom_emb = jnp.dot(jnp.concatenate([var2, x_new], axis=1), w_atom,
                       preferred_element_type=f32) + b_atom               # (B*N, D)
    o_ref[...] = jnp.dot(pew_ref[...], atom_emb, preferred_element_type=f32)  # (B, D)


# --------------------------------------------------------------------------
# pallas_call wrapper (single grid step, 9 packed input refs)
# --------------------------------------------------------------------------
def _full_spec(shape):
    nd = len(shape)
    return pl.BlockSpec(tuple(shape), lambda i, _nd=nd: (0,) * _nd)


def fused_forward(w_main, w_qkvo, w_sc, bp, x2d, graphs2d, mix, pe_w, scat,
                  *, batch, nodes, pairs):
    D = x2d.shape[1]
    kern = functools.partial(fused_kernel, batch=batch, nodes=nodes, pairs=pairs,
                             num_heads=NUM_HEADS, att_size=ATT_SIZE, scale=SCALE)
    ins = [x2d, graphs2d, mix, pe_w, scat, w_main, w_qkvo, w_sc, bp]
    return pl.pallas_call(
        kern,
        out_shape=jax.ShapeDtypeStruct((batch, D), jnp.float32),
        grid=(1,),
        in_specs=[_full_spec(a.shape) for a in ins],
        out_specs=_full_spec((batch, D)),
        compiler_params=pltpu.CompilerParams(dimension_semantics=("arbitrary",)),
    )(*ins)


# --------------------------------------------------------------------------
# Host-side static preprocessing (pure numpy) and weight packing
# --------------------------------------------------------------------------
def build_static_tables(predicate_pos, occurrence_list, N, B):
    P = max(1, max(len(o) for o in occurrence_list))
    var_mix_bd = np.zeros((B * N, B * N), np.float32)   # block-diagonal mixer
    pair_mix = np.zeros((B * P, B * N), np.float32)
    pe_w = np.zeros((B, B * N), np.float32)
    atom_keep = np.ones((B, N, N), np.float32)
    pair_keep = np.ones((B, N, N), np.float32)
    scat = np.zeros((B * (N + P), N, N), np.float32)    # one-hot scatter tables

    for b in range(B):
        pos = predicate_pos[b]
        off = b * N
        var_mix_bd[off:off + N, off:off + N] = np.eye(N, dtype=np.float32)
        mult = np.zeros((N,), np.float32)
        owner = {}                    # (r, c) -> node i (later i overrides, torch order)
        for i in range(N):
            if pos[i] != 1:
                continue
            var_mix_bd[off + i, off:off + N] = 0.0
            if i == 0:
                var_mix_bd[off + i, off + 1] = 1.0
                edges, mult[i] = [(1, 0), (0, 1)], 2.0
            elif i == 1:
                var_mix_bd[off + i, off + 0] = 0.5
                var_mix_bd[off + i, off + 2] = 0.5
                edges, mult[i] = [(1, 0), (0, 1), (1, 2), (2, 1)], 3.0
            elif pos[i - 2] == 1:
                var_mix_bd[off + i, off + i + 1] = 1.0
                edges, mult[i] = [(i, i - 1), (i - 1, i)], 2.0
            else:
                var_mix_bd[off + i, off + i - 1] = 0.5
                var_mix_bd[off + i, off + i + 1] = 0.5
                edges, mult[i] = [(i, i - 1), (i, i + 1), (i - 1, i), (i + 1, i)], 3.0
            for rc in edges:
                owner[rc] = i
        for (r, c), i in owner.items():
            atom_keep[b, r, c] = 0.0
            scat[b * (N + P) + i, r, c] = 1.0
        total = float(mult.sum())
        if total > 0.0:
            pe_w[b, off:off + N] = mult / total

        owner_v = {}                  # (r, c) -> pair p (later p overrides)
        for p, (o0, o1) in enumerate(occurrence_list[b]):
            pair_mix[b * P + p, off + o0] += 0.5
            pair_mix[b * P + p, off + o1] += 0.5
            owner_v[(o0, o1)] = p
            owner_v[(o1, o0)] = p
        for (r, c), p in owner_v.items():
            pair_keep[b, r, c] = 0.0
            scat[b * (N + P) + N + p, r, c] = 1.0

    mix = np.concatenate([var_mix_bd, pair_mix], axis=0)   # (B*N + B*P, B*N)
    return mix, pe_w, scat, atom_keep, pair_keep, P


def pack_params(params):
    D = HIDDEN
    w_vs = jnp.zeros((2 * D, 2 * D), jnp.float32)
    w_vs = w_vs.at[:D, :D].set(params['w_var']).at[D:, D:].set(params['w_sym'])
    w_main = jnp.concatenate([w_vs, params['w_atom']], axis=1)            # (2D, 3D)
    w_qkvo = jnp.concatenate([params['w_q'], params['w_k'],
                              params['w_v'], params['w_o']], axis=1)      # (D, 4D)
    w_sc = jnp.zeros((2 * D, 2), jnp.float32)
    w_sc = w_sc.at[:, 0:1].set(params['w_score']).at[:D, 1:2].set(params['w_cross'])
    bp = jnp.zeros((6, 3 * D), jnp.float32)
    bp = bp.at[0, :2 * D].set(jnp.concatenate([params['b_var'][0], params['b_sym'][0]]))
    bp = bp.at[1, :3 * D].set(jnp.concatenate([params['b_q'][0], params['b_k'][0],
                                               params['b_v'][0]]))
    bp = bp.at[2, :D].set(params['b_atom'][0])
    bp = bp.at[3, :D].set(params['b_o'][0])
    bp = bp.at[4, 0].set(params['b_score'][0, 0])
    bp = bp.at[5, 0].set(params['b_cross'][0, 0])
    return w_main, w_qkvo, w_sc, bp


def path_attention_forward(params, x, predicate_pos, variable_tags, atom_graph,
                           variable_graph, attention_mask, occurrence_list):
    # variable_tags / attention_mask are unused by the original torch forward.
    del variable_tags, attention_mask
    B, N, D = x.shape
    mix, pe_w, scat, atom_keep, pair_keep, P = build_static_tables(
        predicate_pos, occurrence_list, N, B)
    w_main, w_qkvo, w_sc, bp = pack_params(params)

    x2d = x.reshape(B * N, D)
    # pre-apply the keep masks and pack both graphs into one (2*B*N, N) slab
    graphs2d = jnp.concatenate([atom_graph * atom_keep,
                                variable_graph * pair_keep],
                               axis=1).reshape(2 * B * N, N)
    pe = fused_forward(w_main, w_qkvo, w_sc, bp, x2d, graphs2d,
                       jnp.asarray(mix), jnp.asarray(pe_w), jnp.asarray(scat),
                       batch=B, nodes=N, pairs=P)                     # (B, D)
    return jnp.broadcast_to(pe[:, None, :], (B, N, D))


# --------------------------------------------------------------------------
# Pure-JAX reference mirroring the torch code (for validation)
# --------------------------------------------------------------------------
def reference_forward(params, x, predicate_pos, atom_graph, variable_graph,
                      occurrence_list):
    B, N, D = x.shape
    H, A = NUM_HEADS, ATT_SIZE

    def lin(v, w, b):
        return v @ w + b[0]

    q = (x @ params['w_q'] + params['b_q']).reshape(B, N, H, A).transpose(0, 2, 1, 3) * SCALE
    k = (x @ params['w_k'] + params['b_k']).reshape(B, N, H, A).transpose(0, 2, 1, 3)
    v = (x @ params['w_v'] + params['b_v']).reshape(B, N, H, A).transpose(0, 2, 1, 3)
    att = q @ k.transpose(0, 1, 3, 2)

    ag, vg = atom_graph, variable_graph
    for b in range(B):
        pos_list = predicate_pos[b]
        for i in range(N):
            if pos_list[i] != 1:
                continue
            if i == 0:
                vf, sf, edges = x[b, 1], x[b, 0], [(1, 0), (0, 1)]
            elif i == 1:
                vf, sf, edges = (x[b, 0] + x[b, 2]) / 2, x[b, 1], \
                    [(1, 0), (0, 1), (1, 2), (2, 1)]
            elif pos_list[i - 2] == 1:
                vf, sf, edges = x[b, i + 1], x[b, i], [(i, i - 1), (i - 1, i)]
            else:
                vf, sf, edges = (x[b, i - 1] + x[b, i + 1]) / 2, x[b, i], \
                    [(i, i - 1), (i, i + 1), (i - 1, i), (i + 1, i)]
            vf = lin(vf, params['w_var'], params['b_var'])
            sf = lin(sf, params['w_sym'], params['b_sym'])
            s = _leaky_relu(lin(jnp.tanh(jnp.concatenate([vf, sf])),
                                params['w_score'], params['b_score']))[0]
            for r, c in edges:
                ag = ag.at[b, r, c].set(s)
        for (o0, o1) in occurrence_list[b]:
            s = _leaky_relu(lin((x[b, o0] + x[b, o1]) / 2,
                                params['w_cross'], params['b_cross']))[0]
            vg = vg.at[b, o0, o1].set(s)
            vg = vg.at[b, o1, o0].set(s)

    ag = 0.2 * ag + 0.8 * jnp.matmul(ag, ag)
    att = att + ag[:, None, :, :]
    att = att + jnp.matmul(vg, vg)[:, None, :, :]
    att = jax.nn.softmax(att, axis=-1)
    xo = (att @ v).transpose(0, 2, 1, 3).reshape(B, N, H * A)
    xo = xo @ params['w_o'] + params['b_o']

    pe = []
    for b in range(B):
        pos_list = predicate_pos[b]
        embeds = []
        for i in range(N):
            if pos_list[i] != 1:
                continue
            if i == 0:
                vf, sf, m = xo[b, 1], xo[b, 0], 2
            elif i == 1:
                vf, sf, m = (xo[b, 0] + xo[b, 2]) / 2, xo[b, 1], 3
            elif pos_list[i - 2] == 1:
                vf, sf, m = xo[b, i + 1], xo[b, i], 2
            else:
                vf, sf, m = (xo[b, i - 1] + xo[b, i + 1]) / 2, xo[b, i], 3
            emb = lin(jnp.concatenate([vf, sf]), params['w_atom'], params['b_atom'])
            embeds += [emb] * m
        item = jnp.stack(embeds).mean(0)
        pe.append(jnp.broadcast_to(item[None], (N, D)))
    return jnp.stack(pe)


# --------------------------------------------------------------------------
def init_params(key):
    D = HIDDEN
    ks = jax.random.split(key, 18)

    def w(k, shape, s=0.1):
        return jax.random.normal(k, shape, jnp.float32) * s

    return {
        'w_var':   w(ks[0], (D, D)),      'b_var':   w(ks[1], (1, D), 0.05),
        'w_sym':   w(ks[2], (D, D)),      'b_sym':   w(ks[3], (1, D), 0.05),
        'w_score': w(ks[4], (2 * D, 1)),  'b_score': w(ks[5], (1, 1), 0.05),
        'w_cross': w(ks[6], (D, 1)),      'b_cross': w(ks[7], (1, 1), 0.05),
        'w_atom':  w(ks[8], (2 * D, D)),  'b_atom':  w(ks[9], (1, D), 0.05),
        'w_q':     w(ks[10], (D, D)),     'b_q':     w(ks[11], (1, D), 0.05),
        'w_k':     w(ks[12], (D, D)),     'b_k':     w(ks[13], (1, D), 0.05),
        'w_v':     w(ks[14], (D, D)),     'b_v':     w(ks[15], (1, D), 0.05),
        'w_o':     w(ks[16], (D, D)),     'b_o':     w(ks[17], (1, D), 0.05),
    }


if __name__ == "__main__":
    B, N, D = 2, 8, HIDDEN
    key = jax.random.PRNGKey(0)
    kx, kg, kv = jax.random.split(key, 3)
    x = jax.random.normal(kx, (B, N, D), jnp.float32)

    # static host lists (exercise all branches + overrides at i=0/i=1 and a
    # padded occurrence list)
    predicate_pos = [[1, 1, 0, 1, 0, 1, 0, 0],
                     [0, 1, 0, 0, 1, 0, 0, 0]]
    occurrence_list = [[(1, 3), (3, 5)], [(0, 2)]]
    atom_graph = 0.1 * jax.random.normal(kg, (B, N, N), jnp.float32)
    variable_graph = 0.1 * jax.random.normal(kv, (B, N, N), jnp.float32)
    variable_tags = None
    attention_mask = None

    params = init_params(jax.random.PRNGKey(42))

    out = path_attention_forward(params, x, predicate_pos, variable_tags,
                                 atom_graph, variable_graph, attention_mask,
                                 occurrence_list)
    out = jax.block_until_ready(out)
    assert out.shape == (B, N, D)

    ref = jax.block_until_ready(
        reference_forward(params, x, predicate_pos, atom_graph,
                          variable_graph, occurrence_list))
    # 5e-3 headroom accounts for the EUP approximate reciprocal used in the fused
    # softmax; everything else is exact f32.
    max_diff = float(jnp.max(jnp.abs(out - ref)))
    assert max_diff < 5e-3, f"mismatch vs reference: {max_diff}"

    print("KERNEL_OK")
</pallas_src>

<mosaic_0001>
module attributes {stable_mosaic.version = 11 : i64} {
  func.func @fused_kernel(%arg0: i32, %arg1: memref<16x32xf32, #tpu.memory_space<vmem>>, %arg2: memref<32x8xf32, #tpu.memory_space<vmem>>, %arg3: memref<20x16xf32, #tpu.memory_space<vmem>>, %arg4: memref<2x16xf32, #tpu.memory_space<vmem>>, %arg5: memref<20x8x8xf32, #tpu.memory_space<vmem>>, %arg6: memref<64x96xf32, #tpu.memory_space<vmem>>, %arg7: memref<32x128xf32, #tpu.memory_space<vmem>>, %arg8: memref<64x2xf32, #tpu.memory_space<vmem>>, %arg9: memref<6x96xf32, #tpu.memory_space<vmem>>, %arg10: memref<2x32xf32, #tpu.memory_space<vmem>>) attributes {dimension_semantics = [#tpu.dimension_semantics<arbitrary>], iteration_bounds = array<i64: 1>, scalar_prefetch = 0 : i64, scratch_operands = 0 : i64, tpu.core_type = #tpu.core_type<tc>, window_params = [{pipeline_mode = #tpu.pipeline_mode<synchronous>, transform_indices = @transform_0, window_bounds = array<i64: 16, 32>}, {pipeline_mode = #tpu.pipeline_mode<synchronous>, transform_indices = @transform_1, window_bounds = array<i64: 32, 8>}, {pipeline_mode = #tpu.pipeline_mode<synchronous>, transform_indices = @transform_2, window_bounds = array<i64: 20, 16>}, {pipeline_mode = #tpu.pipeline_mode<synchronous>, transform_indices = @transform_3, window_bounds = array<i64: 2, 16>}, {pipeline_mode = #tpu.pipeline_mode<synchronous>, transform_indices = @transform_4, window_bounds = array<i64: 20, 8, 8>}, {pipeline_mode = #tpu.pipeline_mode<synchronous>, transform_indices = @transform_5, window_bounds = array<i64: 64, 96>}, {pipeline_mode = #tpu.pipeline_mode<synchronous>, transform_indices = @transform_6, window_bounds = array<i64: 32, 128>}, {pipeline_mode = #tpu.pipeline_mode<synchronous>, transform_indices = @transform_7, window_bounds = array<i64: 64, 2>}, {pipeline_mode = #tpu.pipeline_mode<synchronous>, transform_indices = @transform_8, window_bounds = array<i64: 6, 96>}, {pipeline_mode = #tpu.pipeline_mode<synchronous>, transform_indices = @transform_9, window_bounds = array<i64: 2, 32>}]} {
    %c0 = arith.constant 0 : index
    %c0_0 = arith.constant 0 : index
    %0 = vector.load %arg1[%c0, %c0_0] : memref<16x32xf32, #tpu.memory_space<vmem>>, vector<16x32xf32>
    %c0_1 = arith.constant 0 : index
    %c0_2 = arith.constant 0 : index
    %1 = vector.load %arg6[%c0_1, %c0_2] : memref<64x96xf32, #tpu.memory_space<vmem>>, vector<64x96xf32>
    %2 = vector.extract_strided_slice %1 {offsets = [0, 0], sizes = [64, 64], strides = [1, 1]} : vector<64x96xf32> to vector<64x64xf32>
    %3 = vector.extract_strided_slice %1 {offsets = [0, 64], sizes = [64, 32], strides = [1, 1]} : vector<64x96xf32> to vector<64x32xf32>
    %c0_3 = arith.constant 0 : index
    %c0_4 = arith.constant 0 : index
    %4 = vector.load %arg7[%c0_3, %c0_4] : memref<32x128xf32, #tpu.memory_space<vmem>>, vector<32x128xf32>
    %c0_5 = arith.constant 0 : index
    %c0_6 = arith.constant 0 : index
    %5 = vector.load %arg8[%c0_5, %c0_6] : memref<64x2xf32, #tpu.memory_space<vmem>>, vector<64x2xf32>
    %c0_7 = arith.constant 0 : index
    %c0_8 = arith.constant 0 : index
    %6 = vector.load %arg9[%c0_7, %c0_8] : memref<6x96xf32, #tpu.memory_space<vmem>>, vector<6x96xf32>
    %7 = vector.extract_strided_slice %6 {offsets = [0, 0], sizes = [1, 64], strides = [1, 1]} : vector<6x96xf32> to vector<1x64xf32>
    %8 = vector.extract_strided_slice %6 {offsets = [1, 0], sizes = [1, 96], strides = [1, 1]} : vector<6x96xf32> to vector<1x96xf32>
    %9 = vector.extract_strided_slice %6 {offsets = [2, 0], sizes = [1, 32], strides = [1, 1]} : vector<6x96xf32> to vector<1x32xf32>
    %10 = vector.extract_strided_slice %6 {offsets = [3, 0], sizes = [1, 32], strides = [1, 1]} : vector<6x96xf32> to vector<1x32xf32>
    %11 = vector.extract_strided_slice %6 {offsets = [4, 0], sizes = [1, 1], strides = [1, 1]} : vector<6x96xf32> to vector<1x1xf32>
    %12 = vector.extract_strided_slice %6 {offsets = [5, 0], sizes = [1, 1], strides = [1, 1]} : vector<6x96xf32> to vector<1x1xf32>
    %c0_9 = arith.constant 0 : index
    %c0_10 = arith.constant 0 : index
    %13 = vector.load %arg3[%c0_9, %c0_10] : memref<20x16xf32, #tpu.memory_space<vmem>>, vector<20x16xf32>
    %cst = arith.constant dense<0.000000e+00> : vector<20x32xf32>
    %14 = tpu.matmul %13, %0, %cst {dimension_numbers = #tpu.dot_dimension_numbers<[1], [0], [0], [1], [0, 0, 1, 1], [], []>} : vector<20x16xf32>, vector<16x32xf32>, vector<20x32xf32> -> vector<20x32xf32>
    %15 = vector.extract_strided_slice %14 {offsets = [0, 0], sizes = [16, 32], strides = [1, 1]} : vector<20x32xf32> to vector<16x32xf32>
    %16 = vector.extract_strided_slice %14 {offsets = [16, 0], sizes = [4, 32], strides = [1, 1]} : vector<20x32xf32> to vector<4x32xf32>
    %17 = tpu.concatenate %15, %0 in 1 : vector<16x32xf32>, vector<16x32xf32> -> vector<16x64xf32>
    %cst_11 = arith.constant dense<0.000000e+00> : vector<16x64xf32>
    %18 = tpu.matmul %17, %2, %cst_11 {dimension_numbers = #tpu.dot_dimension_numbers<[1], [0], [0], [1], [0, 0, 1, 1], [], []>} : vector<16x64xf32>, vector<64x64xf32>, vector<16x64xf32> -> vector<16x64xf32>
    %19 = vector.broadcast %7 : vector<1x64xf32> to vector<16x64xf32>
    %20 = arith.addf %18, %19 : vector<16x64xf32>
    %21 = math.tanh %20 : vector<16x64xf32>
    %22 = vector.extract_strided_slice %5 {offsets = [0, 0], sizes = [64, 1], strides = [1, 1]} : vector<64x2xf32> to vector<64x1xf32>
    %cst_12 = arith.constant dense<0.000000e+00> : vector<16x1xf32>
    %23 = tpu.matmul %21, %22, %cst_12 {dimension_numbers = #tpu.dot_dimension_numbers<[1], [0], [0], [1], [0, 0, 1, 1], [], []>} : vector<16x64xf32>, vector<64x1xf32>, vector<16x1xf32> -> vector<16x1xf32>
    %24 = vector.broadcast %11 : vector<1x1xf32> to vector<16x1xf32>
    %25 = arith.addf %23, %24 : vector<16x1xf32>
    %cst_13 = arith.constant 0.000000e+00 : f32
    %26 = vector.broadcast %cst_13 : f32 to vector<16x1xf32>
    %27 = arith.cmpf oge, %25, %26 : vector<16x1xf32>
    %cst_14 = arith.constant 2.000000e-02 : f32
    %28 = vector.broadcast %cst_14 : f32 to vector<16x1xf32>
    %29 = arith.mulf %28, %25 : vector<16x1xf32>
    %30 = arith.select %27, %25, %29 : vector<16x1xi1>, vector<16x1xf32>
    %31 = vector.extract_strided_slice %5 {offsets = [0, 1], sizes = [32, 1], strides = [1, 1]} : vector<64x2xf32> to vector<32x1xf32>
    %cst_15 = arith.constant dense<0.000000e+00> : vector<4x1xf32>
    %32 = tpu.matmul %16, %31, %cst_15 {dimension_numbers = #tpu.dot_dimension_numbers<[1], [0], [0], [1], [0, 0, 1, 1], [], []>} : vector<4x32xf32>, vector<32x1xf32>, vector<4x1xf32> -> vector<4x1xf32>
    %33 = vector.broadcast %12 : vector<1x1xf32> to vector<4x1xf32>
    %34 = arith.addf %32, %33 : vector<4x1xf32>
    %cst_16 = arith.constant 0.000000e+00 : f32
    %35 = vector.broadcast %cst_16 : f32 to vector<4x1xf32>
    %36 = arith.cmpf oge, %34, %35 : vector<4x1xf32>
    %cst_17 = arith.constant 2.000000e-02 : f32
    %37 = vector.broadcast %cst_17 : f32 to vector<4x1xf32>
    %38 = arith.mulf %37, %34 : vector<4x1xf32>
    %39 = arith.select %36, %34, %38 : vector<4x1xi1>, vector<4x1xf32>
    %40 = vector.extract_strided_slice %4 {offsets = [0, 0], sizes = [32, 96], strides = [1, 1]} : vector<32x128xf32> to vector<32x96xf32>
    %cst_18 = arith.constant dense<0.000000e+00> : vector<16x96xf32>
    %41 = tpu.matmul %0, %40, %cst_18 {dimension_numbers = #tpu.dot_dimension_numbers<[1], [0], [0], [1], [0, 0, 1, 1], [], []>} : vector<16x32xf32>, vector<32x96xf32>, vector<16x96xf32> -> vector<16x96xf32>
    %42 = vector.broadcast %8 : vector<1x96xf32> to vector<16x96xf32>
    %43 = arith.addf %41, %42 : vector<16x96xf32>
    %44 = vector.extract_strided_slice %43 {offsets = [0, 0], sizes = [16, 32], strides = [1, 1]} : vector<16x96xf32> to vector<16x32xf32>
    %cst_19 = arith.constant 0.353553385 : f32
    %45 = vector.broadcast %cst_19 : f32 to vector<16x32xf32>
    %46 = arith.mulf %44, %45 : vector<16x32xf32>
    %47 = vector.extract_strided_slice %43 {offsets = [0, 32], sizes = [16, 32], strides = [1, 1]} : vector<16x96xf32> to vector<16x32xf32>
    %48 = vector.extract_strided_slice %43 {offsets = [0, 64], sizes = [16, 32], strides = [1, 1]} : vector<16x96xf32> to vector<16x32xf32>
    %c0_20 = arith.constant 0 : index
    %c0_21 = arith.constant 0 : index
    %49 = vector.load %arg2[%c0_20, %c0_21] : memref<32x8xf32, #tpu.memory_space<vmem>>, vector<32x8xf32>
    %c0_22 = arith.constant 0 : index
    %c0_23 = arith.constant 0 : index
    %c0_24 = arith.constant 0 : index
    %50 = vector.load %arg5[%c0_22, %c0_23, %c0_24] : memref<20x8x8xf32, #tpu.memory_space<vmem>>, vector<20x8x8xf32>
    %51 = vector.extract_strided_slice %49 {offsets = [0, 0], sizes = [8, 8], strides = [1, 1]} : vector<32x8xf32> to vector<8x8xf32>
    %52 = vector.extract_strided_slice %49 {offsets = [8, 0], sizes = [8, 8], strides = [1, 1]} : vector<32x8xf32> to vector<8x8xf32>
    %53 = vector.extract_strided_slice %30 {offsets = [0, 0], sizes = [8, 1], strides = [1, 1]} : vector<16x1xf32> to vector<8x1xf32>
    %54 = vector.extract_strided_slice %39 {offsets = [0, 0], sizes = [2, 1], strides = [1, 1]} : vector<4x1xf32> to vector<2x1xf32>
    %55 = vector.extract_strided_slice %50 {offsets = [0, 0, 0], sizes = [8, 8, 8], strides = [1, 1, 1]} : vector<20x8x8xf32> to vector<8x8x8xf32>
    %56 = vector.extract_strided_slice %50 {offsets = [8, 0, 0], sizes = [2, 8, 8], strides = [1, 1, 1]} : vector<20x8x8xf32> to vector<2x8x8xf32>
    %57 = vector.shape_cast %53 : vector<8x1xf32> to vector<8x1x1xf32>
    %58 = vector.broadcast %57 : vector<8x1x1xf32> to vector<8x8x8xf32>
    %59 = arith.mulf %58, %55 : vector<8x8x8xf32>
    %cst_25 = arith.constant dense<0.000000e+00> : vector<8x8xf32>
    %60 = vector.multi_reduction <add>, %59, %cst_25 [0] : vector<8x8x8xf32> to vector<8x8xf32>
    %61 = arith.addf %51, %60 : vector<8x8xf32>
    %62 = vector.shape_cast %54 : vector<2x1xf32> to vector<2x1x1xf32>
    %63 = vector.broadcast %62 : vector<2x1x1xf32> to vector<2x8x8xf32>
    %64 = arith.mulf %63, %56 : vector<2x8x8xf32>
    %cst_26 = arith.constant dense<0.000000e+00> : vector<8x8xf32>
    %65 = vector.multi_reduction <add>, %64, %cst_26 [0] : vector<2x8x8xf32> to vector<8x8xf32>
    %66 = arith.addf %52, %65 : vector<8x8xf32>
    %cst_27 = arith.constant 2.000000e-01 : f32
    %67 = vector.broadcast %cst_27 : f32 to vector<8x8xf32>
    %68 = arith.mulf %67, %61 : vector<8x8xf32>
    %cst_28 = arith.constant 8.000000e-01 : f32
    %69 = vector.broadcast %cst_28 : f32 to vector<8x8xf32>
    %70 = arith.mulf %69, %61 : vector<8x8xf32>
    %71 = tpu.concatenate %70, %66 in 1 : vector<8x8xf32>, vector<8x8xf32> -> vector<8x16xf32>
    %72 = tpu.concatenate %61, %66 in 0 : vector<8x8xf32>, vector<8x8xf32> -> vector<16x8xf32>
    %cst_29 = arith.constant dense<0.000000e+00> : vector<8x8xf32>
    %73 = tpu.matmul %71, %72, %cst_29 {dimension_numbers = #tpu.dot_dimension_numbers<[1], [0], [0], [1], [0, 0, 1, 1], [], []>} : vector<8x16xf32>, vector<16x8xf32>, vector<8x8xf32> -> vector<8x8xf32>
    %74 = arith.addf %68, %73 : vector<8x8xf32>
    %75 = vector.extract_strided_slice %46 {offsets = [0, 0], sizes = [8, 32], strides = [1, 1]} : vector<16x32xf32> to vector<8x32xf32>
    %76 = vector.extract_strided_slice %47 {offsets = [0, 0], sizes = [8, 32], strides = [1, 1]} : vector<16x32xf32> to vector<8x32xf32>
    %77 = tpu.transpose %76, [1, 0] : vector<8x32xf32> -> vector<32x8xf32>
    %78 = vector.extract_strided_slice %75 {offsets = [0, 0], sizes = [8, 8], strides = [1, 1]} : vector<8x32xf32> to vector<8x8xf32>
    %79 = vector.extract_strided_slice %77 {offsets = [0, 0], sizes = [8, 8], strides = [1, 1]} : vector<32x8xf32> to vector<8x8xf32>
    %cst_30 = arith.constant dense<0.000000e+00> : vector<8x8xf32>
    %80 = tpu.matmul %78, %79, %cst_30 {dimension_numbers = #tpu.dot_dimension_numbers<[1], [0], [0], [1], [0, 0, 1, 1], [], []>} : vector<8x8xf32>, vector<8x8xf32>, vector<8x8xf32> -> vector<8x8xf32>
    %81 = arith.addf %80, %74 : vector<8x8xf32>
    %82 = vector.extract_strided_slice %75 {offsets = [0, 8], sizes = [8, 8], strides = [1, 1]} : vector<8x32xf32> to vector<8x8xf32>
    %83 = vector.extract_strided_slice %77 {offsets = [8, 0], sizes = [8, 8], strides = [1, 1]} : vector<32x8xf32> to vector<8x8xf32>
    %cst_31 = arith.constant dense<0.000000e+00> : vector<8x8xf32>
    %84 = tpu.matmul %82, %83, %cst_31 {dimension_numbers = #tpu.dot_dimension_numbers<[1], [0], [0], [1], [0, 0, 1, 1], [], []>} : vector<8x8xf32>, vector<8x8xf32>, vector<8x8xf32> -> vector<8x8xf32>
    %85 = arith.addf %84, %74 : vector<8x8xf32>
    %86 = vector.extract_strided_slice %75 {offsets = [0, 16], sizes = [8, 8], strides = [1, 1]} : vector<8x32xf32> to vector<8x8xf32>
    %87 = vector.extract_strided_slice %77 {offsets = [16, 0], sizes = [8, 8], strides = [1, 1]} : vector<32x8xf32> to vector<8x8xf32>
    %cst_32 = arith.constant dense<0.000000e+00> : vector<8x8xf32>
    %88 = tpu.matmul %86, %87, %cst_32 {dimension_numbers = #tpu.dot_dimension_numbers<[1], [0], [0], [1], [0, 0, 1, 1], [], []>} : vector<8x8xf32>, vector<8x8xf32>, vector<8x8xf32> -> vector<8x8xf32>
    %89 = arith.addf %88, %74 : vector<8x8xf32>
    %90 = vector.extract_strided_slice %75 {offsets = [0, 24], sizes = [8, 8], strides = [1, 1]} : vector<8x32xf32> to vector<8x8xf32>
    %91 = vector.extract_strided_slice %77 {offsets = [24, 0], sizes = [8, 8], strides = [1, 1]} : vector<32x8xf32> to vector<8x8xf32>
    %cst_33 = arith.constant dense<0.000000e+00> : vector<8x8xf32>
    %92 = tpu.matmul %90, %91, %cst_33 {dimension_numbers = #tpu.dot_dimension_numbers<[1], [0], [0], [1], [0, 0, 1, 1], [], []>} : vector<8x8xf32>, vector<8x8xf32>, vector<8x8xf32> -> vector<8x8xf32>
    %93 = arith.addf %92, %74 : vector<8x8xf32>
    %94 = vector.extract_strided_slice %49 {offsets = [16, 0], sizes = [8, 8], strides = [1, 1]} : vector<32x8xf32> to vector<8x8xf32>
    %95 = vector.extract_strided_slice %49 {offsets = [24, 0], sizes = [8, 8], strides = [1, 1]} : vector<32x8xf32> to vector<8x8xf32>
    %96 = vector.extract_strided_slice %30 {offsets = [8, 0], sizes = [8, 1], strides = [1, 1]} : vector<16x1xf32> to vector<8x1xf32>
    %97 = vector.extract_strided_slice %39 {offsets = [2, 0], sizes = [2, 1], strides = [1, 1]} : vector<4x1xf32> to vector<2x1xf32>
    %98 = vector.extract_strided_slice %50 {offsets = [10, 0, 0], sizes = [8, 8, 8], strides = [1, 1, 1]} : vector<20x8x8xf32> to vector<8x8x8xf32>
    %99 = vector.extract_strided_slice %50 {offsets = [18, 0, 0], sizes = [2, 8, 8], strides = [1, 1, 1]} : vector<20x8x8xf32> to vector<2x8x8xf32>
    %100 = vector.shape_cast %96 : vector<8x1xf32> to vector<8x1x1xf32>
    %101 = vector.broadcast %100 : vector<8x1x1xf32> to vector<8x8x8xf32>
    %102 = arith.mulf %101, %98 : vector<8x8x8xf32>
    %cst_34 = arith.constant dense<0.000000e+00> : vector<8x8xf32>
    %103 = vector.multi_reduction <add>, %102, %cst_34 [0] : vector<8x8x8xf32> to vector<8x8xf32>
    %104 = arith.addf %94, %103 : vector<8x8xf32>
    %105 = vector.shape_cast %97 : vector<2x1xf32> to vector<2x1x1xf32>
    %106 = vector.broadcast %105 : vector<2x1x1xf32> to vector<2x8x8xf32>
    %107 = arith.mulf %106, %99 : vector<2x8x8xf32>
    %cst_35 = arith.constant dense<0.000000e+00> : vector<8x8xf32>
    %108 = vector.multi_reduction <add>, %107, %cst_35 [0] : vector<2x8x8xf32> to vector<8x8xf32>
    %109 = arith.addf %95, %108 : vector<8x8xf32>
    %cst_36 = arith.constant 2.000000e-01 : f32
    %110 = vector.broadcast %cst_36 : f32 to vector<8x8xf32>
    %111 = arith.mulf %110, %104 : vector<8x8xf32>
    %cst_37 = arith.constant 8.000000e-01 : f32
    %112 = vector.broadcast %cst_37 : f32 to vector<8x8xf32>
    %113 = arith.mulf %112, %104 : vector<8x8xf32>
    %114 = tpu.concatenate %113, %109 in 1 : vector<8x8xf32>, vector<8x8xf32> -> vector<8x16xf32>
    %115 = tpu.concatenate %104, %109 in 0 : vector<8x8xf32>, vector<8x8xf32> -> vector<16x8xf32>
    %cst_38 = arith.constant dense<0.000000e+00> : vector<8x8xf32>
    %116 = tpu.matmul %114, %115, %cst_38 {dimension_numbers = #tpu.dot_dimension_numbers<[1], [0], [0], [1], [0, 0, 1, 1], [], []>} : vector<8x16xf32>, vector<16x8xf32>, vector<8x8xf32> -> vector<8x8xf32>
    %117 = arith.addf %111, %116 : vector<8x8xf32>
    %118 = vector.extract_strided_slice %46 {offsets = [8, 0], sizes = [8, 32], strides = [1, 1]} : vector<16x32xf32> to vector<8x32xf32>
    %119 = vector.extract_strided_slice %47 {offsets = [8, 0], sizes = [8, 32], strides = [1, 1]} : vector<16x32xf32> to vector<8x32xf32>
    %120 = tpu.transpose %119, [1, 0] : vector<8x32xf32> -> vector<32x8xf32>
    %121 = vector.extract_strided_slice %118 {offsets = [0, 0], sizes = [8, 8], strides = [1, 1]} : vector<8x32xf32> to vector<8x8xf32>
    %122 = vector.extract_strided_slice %120 {offsets = [0, 0], sizes = [8, 8], strides = [1, 1]} : vector<32x8xf32> to vector<8x8xf32>
    %cst_39 = arith.constant dense<0.000000e+00> : vector<8x8xf32>
    %123 = tpu.matmul %121, %122, %cst_39 {dimension_numbers = #tpu.dot_dimension_numbers<[1], [0], [0], [1], [0, 0, 1, 1], [], []>} : vector<8x8xf32>, vector<8x8xf32>, vector<8x8xf32> -> vector<8x8xf32>
    %124 = arith.addf %123, %117 : vector<8x8xf32>
    %125 = vector.extract_strided_slice %118 {offsets = [0, 8], sizes = [8, 8], strides = [1, 1]} : vector<8x32xf32> to vector<8x8xf32>
    %126 = vector.extract_strided_slice %120 {offsets = [8, 0], sizes = [8, 8], strides = [1, 1]} : vector<32x8xf32> to vector<8x8xf32>
    %cst_40 = arith.constant dense<0.000000e+00> : vector<8x8xf32>
    %127 = tpu.matmul %125, %126, %cst_40 {dimension_numbers = #tpu.dot_dimension_numbers<[1], [0], [0], [1], [0, 0, 1, 1], [], []>} : vector<8x8xf32>, vector<8x8xf32>, vector<8x8xf32> -> vector<8x8xf32>
    %128 = arith.addf %127, %117 : vector<8x8xf32>
    %129 = vector.extract_strided_slice %118 {offsets = [0, 16], sizes = [8, 8], strides = [1, 1]} : vector<8x32xf32> to vector<8x8xf32>
    %130 = vector.extract_strided_slice %120 {offsets = [16, 0], sizes = [8, 8], strides = [1, 1]} : vector<32x8xf32> to vector<8x8xf32>
    %cst_41 = arith.constant dense<0.000000e+00> : vector<8x8xf32>
    %131 = tpu.matmul %129, %130, %cst_41 {dimension_numbers = #tpu.dot_dimension_numbers<[1], [0], [0], [1], [0, 0, 1, 1], [], []>} : vector<8x8xf32>, vector<8x8xf32>, vector<8x8xf32> -> vector<8x8xf32>
    %132 = arith.addf %131, %117 : vector<8x8xf32>
    %133 = vector.extract_strided_slice %118 {offsets = [0, 24], sizes = [8, 8], strides = [1, 1]} : vector<8x32xf32> to vector<8x8xf32>
    %134 = vector.extract_strided_slice %120 {offsets = [24, 0], sizes = [8, 8], strides = [1, 1]} : vector<32x8xf32> to vector<8x8xf32>
    %cst_42 = arith.constant dense<0.000000e+00> : vector<8x8xf32>
    %135 = tpu.matmul %133, %134, %cst_42 {dimension_numbers = #tpu.dot_dimension_numbers<[1], [0], [0], [1], [0, 0, 1, 1], [], []>} : vector<8x8xf32>, vector<8x8xf32>, vector<8x8xf32> -> vector<8x8xf32>
    %136 = arith.addf %135, %117 : vector<8x8xf32>
    %137 = tpu.concatenate %81, %85, %89, %93, %124, %128, %132, %136 in 0 : vector<8x8xf32>, vector<8x8xf32>, vector<8x8xf32>, vector<8x8xf32>, vector<8x8xf32>, vector<8x8xf32>, vector<8x8xf32>, vector<8x8xf32> -> vector<64x8xf32>
    %cst_43 = arith.constant dense<0xFF800000> : vector<64xf32>
    %138 = vector.multi_reduction <maximumf>, %137, %cst_43 [1] : vector<64x8xf32> to vector<64xf32>
    %139 = vector.shape_cast %138 : vector<64xf32> to vector<64x1xf32>
    %140 = vector.broadcast %139 : vector<64x1xf32> to vector<64x8xf32>
    %141 = arith.subf %137, %140 : vector<64x8xf32>
    %142 = math.exp %141 : vector<64x8xf32>
    %cst_44 = arith.constant dense<0.000000e+00> : vector<64xf32>
    %143 = vector.multi_reduction <add>, %142, %cst_44 [1] : vector<64x8xf32> to vector<64xf32>
    %144 = vector.shape_cast %143 : vector<64xf32> to vector<64x1xf32>
    %145 = tpu.reciprocal %144 {approx = true} : vector<64x1xf32> -> vector<64x1xf32>
    %146 = vector.broadcast %145 : vector<64x1xf32> to vector<64x8xf32>
    %147 = arith.mulf %142, %146 : vector<64x8xf32>
    %148 = vector.extract_strided_slice %48 {offsets = [0, 0], sizes = [8, 32], strides = [1, 1]} : vector<16x32xf32> to vector<8x32xf32>
    %149 = vector.extract_strided_slice %147 {offsets = [0, 0], sizes = [8, 8], strides = [1, 1]} : vector<64x8xf32> to vector<8x8xf32>
    %150 = vector.extract_strided_slice %148 {offsets = [0, 0], sizes = [8, 8], strides = [1, 1]} : vector<8x32xf32> to vector<8x8xf32>
    %cst_45 = arith.constant dense<0.000000e+00> : vector<8x8xf32>
    %151 = tpu.matmul %149, %150, %cst_45 {dimension_numbers = #tpu.dot_dimension_numbers<[1], [0], [0], [1], [0, 0, 1, 1], [], []>} : vector<8x8xf32>, vector<8x8xf32>, vector<8x8xf32> -> vector<8x8xf32>
    %152 = vector.extract_strided_slice %147 {offsets = [8, 0], sizes = [8, 8], strides = [1, 1]} : vector<64x8xf32> to vector<8x8xf32>
    %153 = vector.extract_strided_slice %148 {offsets = [0, 8], sizes = [8, 8], strides = [1, 1]} : vector<8x32xf32> to vector<8x8xf32>
    %cst_46 = arith.constant dense<0.000000e+00> : vector<8x8xf32>
    %154 = tpu.matmul %152, %153, %cst_46 {dimension_numbers = #tpu.dot_dimension_numbers<[1], [0], [0], [1], [0, 0, 1, 1], [], []>} : vector<8x8xf32>, vector<8x8xf32>, vector<8x8xf32> -> vector<8x8xf32>
    %155 = vector.extract_strided_slice %147 {offsets = [16, 0], sizes = [8, 8], strides = [1, 1]} : vector<64x8xf32> to vector<8x8xf32>
    %156 = vector.extract_strided_slice %148 {offsets = [0, 16], sizes = [8, 8], strides = [1, 1]} : vector<8x32xf32> to vector<8x8xf32>
    %cst_47 = arith.constant dense<0.000000e+00> : vector<8x8xf32>
    %157 = tpu.matmul %155, %156, %cst_47 {dimension_numbers = #tpu.dot_dimension_numbers<[1], [0], [0], [1], [0, 0, 1, 1], [], []>} : vector<8x8xf32>, vector<8x8xf32>, vector<8x8xf32> -> vector<8x8xf32>
    %158 = vector.extract_strided_slice %147 {offsets = [24, 0], sizes = [8, 8], strides = [1, 1]} : vector<64x8xf32> to vector<8x8xf32>
    %159 = vector.extract_strided_slice %148 {offsets = [0, 24], sizes = [8, 8], strides = [1, 1]} : vector<8x32xf32> to vector<8x8xf32>
    %cst_48 = arith.constant dense<0.000000e+00> : vector<8x8xf32>
    %160 = tpu.matmul %158, %159, %cst_48 {dimension_numbers = #tpu.dot_dimension_numbers<[1], [0], [0], [1], [0, 0, 1, 1], [], []>} : vector<8x8xf32>, vector<8x8xf32>, vector<8x8xf32> -> vector<8x8xf32>
    %161 = tpu.concatenate %151, %154, %157, %160 in 1 : vector<8x8xf32>, vector<8x8xf32>, vector<8x8xf32>, vector<8x8xf32> -> vector<8x32xf32>
    %162 = vector.extract_strided_slice %48 {offsets = [8, 0], sizes = [8, 32], strides = [1, 1]} : vector<16x32xf32> to vector<8x32xf32>
    %163 = vector.extract_strided_slice %147 {offsets = [32, 0], sizes = [8, 8], strides = [1, 1]} : vector<64x8xf32> to vector<8x8xf32>
    %164 = vector.extract_strided_slice %162 {offsets = [0, 0], sizes = [8, 8], strides = [1, 1]} : vector<8x32xf32> to vector<8x8xf32>
    %cst_49 = arith.constant dense<0.000000e+00> : vector<8x8xf32>
    %165 = tpu.matmul %163, %164, %cst_49 {dimension_numbers = #tpu.dot_dimension_numbers<[1], [0], [0], [1], [0, 0, 1, 1], [], []>} : vector<8x8xf32>, vector<8x8xf32>, vector<8x8xf32> -> vector<8x8xf32>
    %166 = vector.extract_strided_slice %147 {offsets = [40, 0], sizes = [8, 8], strides = [1, 1]} : vector<64x8xf32> to vector<8x8xf32>
    %167 = vector.extract_strided_slice %162 {offsets = [0, 8], sizes = [8, 8], strides = [1, 1]} : vector<8x32xf32> to vector<8x8xf32>
    %cst_50 = arith.constant dense<0.000000e+00> : vector<8x8xf32>
    %168 = tpu.matmul %166, %167, %cst_50 {dimension_numbers = #tpu.dot_dimension_numbers<[1], [0], [0], [1], [0, 0, 1, 1], [], []>} : vector<8x8xf32>, vector<8x8xf32>, vector<8x8xf32> -> vector<8x8xf32>
    %169 = vector.extract_strided_slice %147 {offsets = [48, 0], sizes = [8, 8], strides = [1, 1]} : vector<64x8xf32> to vector<8x8xf32>
    %170 = vector.extract_strided_slice %162 {offsets = [0, 16], sizes = [8, 8], strides = [1, 1]} : vector<8x32xf32> to vector<8x8xf32>
    %cst_51 = arith.constant dense<0.000000e+00> : vector<8x8xf32>
    %171 = tpu.matmul %169, %170, %cst_51 {dimension_numbers = #tpu.dot_dimension_numbers<[1], [0], [0], [1], [0, 0, 1, 1], [], []>} : vector<8x8xf32>, vector<8x8xf32>, vector<8x8xf32> -> vector<8x8xf32>
    %172 = vector.extract_strided_slice %147 {offsets = [56, 0], sizes = [8, 8], strides = [1, 1]} : vector<64x8xf32> to vector<8x8xf32>
    %173 = vector.extract_strided_slice %162 {offsets = [0, 24], sizes = [8, 8], strides = [1, 1]} : vector<8x32xf32> to vector<8x8xf32>
    %cst_52 = arith.constant dense<0.000000e+00> : vector<8x8xf32>
    %174 = tpu.matmul %172, %173, %cst_52 {dimension_numbers = #tpu.dot_dimension_numbers<[1], [0], [0], [1], [0, 0, 1, 1], [], []>} : vector<8x8xf32>, vector<8x8xf32>, vector<8x8xf32> -> vector<8x8xf32>
    %175 = tpu.concatenate %165, %168, %171, %174 in 1 : vector<8x8xf32>, vector<8x8xf32>, vector<8x8xf32>, vector<8x8xf32> -> vector<8x32xf32>
    %176 = tpu.concatenate %161, %175 in 0 : vector<8x32xf32>, vector<8x32xf32> -> vector<16x32xf32>
    %177 = vector.extract_strided_slice %4 {offsets = [0, 96], sizes = [32, 32], strides = [1, 1]} : vector<32x128xf32> to vector<32x32xf32>
    %cst_53 = arith.constant dense<0.000000e+00> : vector<16x32xf32>
    %178 = tpu.matmul %176, %177, %cst_53 {dimension_numbers = #tpu.dot_dimension_numbers<[1], [0], [0], [1], [0, 0, 1, 1], [], []>} : vector<16x32xf32>, vector<32x32xf32>, vector<16x32xf32> -> vector<16x32xf32>
    %179 = vector.broadcast %10 : vector<1x32xf32> to vector<16x32xf32>
    %180 = arith.addf %178, %179 : vector<16x32xf32>
    %181 = vector.extract_strided_slice %13 {offsets = [0, 0], sizes = [16, 16], strides = [1, 1]} : vector<20x16xf32> to vector<16x16xf32>
    %cst_54 = arith.constant dense<0.000000e+00> : vector<16x32xf32>
    %182 = tpu.matmul %181, %180, %cst_54 {dimension_numbers = #tpu.dot_dimension_numbers<[1], [0], [0], [1], [0, 0, 1, 1], [], []>} : vector<16x16xf32>, vector<16x32xf32>, vector<16x32xf32> -> vector<16x32xf32>
    %183 = tpu.concatenate %182, %180 in 1 : vector<16x32xf32>, vector<16x32xf32> -> vector<16x64xf32>
    %cst_55 = arith.constant dense<0.000000e+00> : vector<16x32xf32>
    %184 = tpu.matmul %183, %3, %cst_55 {dimension_numbers = #tpu.dot_dimension_numbers<[1], [0], [0], [1], [0, 0, 1, 1], [], []>} : vector<16x64xf32>, vector<64x32xf32>, vector<16x32xf32> -> vector<16x32xf32>
    %185 = vector.broadcast %9 : vector<1x32xf32> to vector<16x32xf32>
    %186 = arith.addf %184, %185 : vector<16x32xf32>
    %c0_56 = arith.constant 0 : index
    %c0_57 = arith.constant 0 : index
    %187 = vector.load %arg4[%c0_56, %c0_57] : memref<2x16xf32, #tpu.memory_space<vmem>>, vector<2x16xf32>
    %cst_58 = arith.constant dense<0.000000e+00> : vector<2x32xf32>
    %188 = tpu.matmul %187, %186, %cst_58 {dimension_numbers = #tpu.dot_dimension_numbers<[1], [0], [0], [1], [0, 0, 1, 1], [], []>} : vector<2x16xf32>, vector<16x32xf32>, vector<2x32xf32> -> vector<2x32xf32>
    %c0_59 = arith.constant 0 : index
    %c0_60 = arith.constant 0 : index
    %189 = vector.load %arg10[%c0_59, %c0_60] : memref<2x32xf32, #tpu.memory_space<vmem>>, vector<2x32xf32>
    tpu.vector_store %arg10[%c0_59, %c0_60], %188 {strides = array<i32>} : memref<2x32xf32, #tpu.memory_space<vmem>>, vector<2x32xf32>,
    return
  }
  func.func @transform_0(%arg0: i32) -> (i32, i32) {
    %c0_i32 = arith.constant 0 : i32
    %c0_i32_0 = arith.constant 0 : i32
    %c0_i32_1 = arith.constant 0 : i32
    return %c0_i32, %c0_i32_0 : i32, i32
  }
  func.func @transform_1(%arg0: i32) -> (i32, i32) {
    %c0_i32 = arith.constant 0 : i32
    %c0_i32_0 = arith.constant 0 : i32
    %c0_i32_1 = arith.constant 0 : i32
    return %c0_i32, %c0_i32_0 : i32, i32
  }
  func.func @transform_2(%arg0: i32) -> (i32, i32) {
    %c0_i32 = arith.constant 0 : i32
    %c0_i32_0 = arith.constant 0 : i32
    %c0_i32_1 = arith.constant 0 : i32
    return %c0_i32, %c0_i32_0 : i32, i32
  }
  func.func @transform_3(%arg0: i32) -> (i32, i32) {
    %c0_i32 = arith.constant 0 : i32
    %c0_i32_0 = arith.constant 0 : i32
    %c0_i32_1 = arith.constant 0 : i32
    return %c0_i32, %c0_i32_0 : i32, i32
  }
  func.func @transform_4(%arg0: i32) -> (i32, i32, i32) {
    %c0_i32 = arith.constant 0 : i32
    %c0_i32_0 = arith.constant 0 : i32
    %c0_i32_1 = arith.constant 0 : i32
    %c0_i32_2 = arith.constant 0 : i32
    return %c0_i32, %c0_i32_0, %c0_i32_1 : i32, i32, i32
  }
  func.func @transform_5(%arg0: i32) -> (i32, i32) {
    %c0_i32 = arith.constant 0 : i32
    %c0_i32_0 = arith.constant 0 : i32
    %c0_i32_1 = arith.constant 0 : i32
    return %c0_i32, %c0_i32_0 : i32, i32
  }
  func.func @transform_6(%arg0: i32) -> (i32, i32) {
    %c0_i32 = arith.constant 0 : i32
    %c0_i32_0 = arith.constant 0 : i32
    %c0_i32_1 = arith.constant 0 : i32
    return %c0_i32, %c0_i32_0 : i32, i32
  }
  func.func @transform_7(%arg0: i32) -> (i32, i32) {
    %c0_i32 = arith.constant 0 : i32
    %c0_i32_0 = arith.constant 0 : i32
    %c0_i32_1 = arith.constant 0 : i32
    return %c0_i32, %c0_i32_0 : i32, i32
  }
  func.func @transform_8(%arg0: i32) -> (i32, i32) {
    %c0_i32 = arith.constant 0 : i32
    %c0_i32_0 = arith.constant 0 : i32
    %c0_i32_1 = arith.constant 0 : i32
    return %c0_i32, %c0_i32_0 : i32, i32
  }
  func.func @transform_9(%arg0: i32) -> (i32, i32) {
    %c0_i32 = arith.constant 0 : i32
    %c0_i32_0 = arith.constant 0 : i32
    %c0_i32_1 = arith.constant 0 : i32
    return %c0_i32, %c0_i32_0 : i32, i32
  }
}

</mosaic_0001>

<bundles_post_ra>
// kernel: tpu_custom_call.1
= control target key start
LH: loop header
LB: loop body
LE: loop exit
PB: predicated region body
PF: predicated region fallthrough
CT: control target
= control target key end

     0   :  { %v3239_v1 = vmov 0.0   ;;  %vm3240_vm0 = vmmov 0   ;;  %vm59_vm1 = vcmask 130048   ;;  %s3241_s15 = smov 32   ;;  %s3242_s19 = smov 127   ;;  %s3857_s0 = inlined_call_operand.vmem [shape: f32[16,32], index: 0, kind: input, shape index: {}]   ;;  %s3858_s1 = inlined_call_operand.vmem [shape: f32[32,8], index: 1, kind: input, shape index: {}]   ;;  %s3859_s2 = inlined_call_operand.vmem [shape: f32[20,16], index: 2, kind: input, shape index: {}]   ;;  %s3860_s3 = inlined_call_operand.vmem [shape: f32[2,16], index: 3, kind: input, shape index: {}]   ;;  %s3861_s4 = inlined_call_operand.vmem [shape: f32[20,8,8], index: 4, kind: input, shape index: {}]   ;;  %s3862_s5 = inlined_call_operand.vmem [shape: f32[64,96], index: 5, kind: input, shape index: {}]   ;;  %s3863_s6 = inlined_call_operand.vmem [shape: f32[32,128], index: 6, kind: input, shape index: {}]   ;;  %s3864_s7 = inlined_call_operand.vmem [shape: f32[64,2], index: 7, kind: input, shape index: {}]   ;;  %s3865_s8 = inlined_call_operand.vmem [shape: f32[6,96], index: 8, kind: input, shape index: {}]   ;;  %s3866_s9 = inlined_call_operand.hbm [shape: f32[2,32], index: 9, kind: output, shape index: {}]  }
   0x1   :  { %v3313_v0 = vld [vmem:[%s3857_s0 + $0x8] sm:$0xff]  ;;  %2936 = vmatprep.subr.mxu1 %v3239_v1  ;;  %v3319_v2 = vld [vmem:[%s3857_s0] sm:$0xff]  ;;  %2940 = vmatprep.mubr.msk.f32.mxu1 %vm3240_vm0, %v3239_v1  ;;  %v42_v4 = vld [vmem:[%s3862_s5 + $0x38] sm:$0xff] }
   0x2   :  { %2937 = vmatpush3.msra.mxu1 %v3313_v0  ;;  %v56_v3 = vld [vmem:[%s3859_s2] sm:$0xff]  ;;  %151 = vrot.lane.b32.xlu0 %v3319_v2, %s3241_s15  ;;  %v3335_v5 = vld [vmem:[%s3864_s7 + $0x18] sm:$0xff]  ;;  %v3344_v6 = vld [vmem:[%s3864_s7 + $0x10] sm:$0xff] }
   0x3   :  { %2938 = vmatprep.subr.mxu1 %v3239_v1  ;;  %353 = vrot.lane.b32.xlu1 %v3335_v5, %s3242_s19 }
   0x4   :  { %2939 = vmatpush3.msra.mxu1 %v3319_v2 }
   0x5   :  { %14 = vsyncpa [#allocation3], 0  ;;  %2941 = vmatmul.mubr.msk.f32.vlgmr.msra.gmra.mxu1 %vm59_vm1, %v56_v3  ;;  %2949 = vmatprep.subr.mxu1 %v42_v4  ;;  %v41_v7 = vld [vmem:[%s3862_s5 + $0x30] sm:$0xff]  ;;  %v57_v8 = vld [vmem:[%s3859_s2 + $0x8] sm:$0xff]  ;;  %vm157_vm2 = vcmask 261120   ;;  %vm164_vm3 = vcmask 523264   ;;  %v160_v38 = vlaneseq }
   0x6   :  { %2943 = vmatprep.mubr.msk.f32.mxu1 %vm3240_vm0, %v3239_v1  ;;  %153 = vrot.lane.b32.xlu0 %v3313_v0, %s3241_s15  ;;  %v40_v9 = vld [vmem:[%s3862_s5 + $0x28] sm:$0xff]  ;;  %v58_v10 = vld [vmem:[%s3859_s2 + $0x10] sm:$0xf]  ;;  %v39_v11 = vld [vmem:[%s3862_s5 + $0x20] sm:$0xff]  ;;  %v3243_v37 = vmov 0   ;;  %vm666_vm5 = vcmask 64512  }
   0x7   :  { %2950 = vmatpush3.msra.mxu1 %v42_v4  ;;  %351 = vrot.lane.b32.xlu1 %v3344_v6, %s3242_s19  ;;  %v38_v12 = vld [vmem:[%s3862_s5 + $0x18] sm:$0xff]  ;;  %v37_v13 = vld [vmem:[%s3862_s5 + $0x10] sm:$0xff]  ;;  %v48_v14 = vld [vmem:[%s3864_s7 + $0x8] sm:$0xff]  ;;  %v3428_v39 = vshrl.u32 %v160_v38, 7  ;;  %v3244_v47 = vmov 1966171168  }
   0x8   :  { %2951 = vmatprep.subr.mxu1 %v41_v7  ;;  %v36_v15 = vld [vmem:[%s3862_s5 + $0x8] sm:$0xff]  ;;  %v47_v16 = vld [vmem:[%s3864_s7] sm:$0xff]  ;;  %v54_v32 = vld [vmem:[%s3864_s7 + $0x38] sm:$0xff]  ;;  %3169 = vset.pattern.permute.xlu1 %v3243_v37  ;;  %v547_v48 = vunpack.c.l.s4 %v3244_v47  ;;  %s3245_s24 = smov 96   ;;  %s3246_s29 = smov 8   ;;  %vm2082_vm8 = vcmask 195584  }
   0x9   :  { %2944 = vmatmul.mubr.msk.f32.gmra.mxu1 %vm59_vm1, %v57_v8  ;;  %v35_v17 = vld [vmem:[%s3862_s5] sm:$0xff]  ;;  %2968 = vmatprep.subr.mxu0 %v54_v32  ;;  %v53_v33 = vld [vmem:[%s3864_s7 + $0x30] sm:$0xff]  ;;  %v52_v34 = vld [vmem:[%s3864_s7 + $0x28] sm:$0xff]  ;;  %v3431_v40 = vsub.s32 0, %v3428_v39  ;;  %v341_v44 = vsub.s32 5, %v3428_v39  ;;  %s3247_s30 = smov 88  }
   0xa   :  { %2946 = vmatprep.mubr.msk.f32.mxu1 %vm3240_vm0, %v3239_v1  ;;  %2952 = vmatpush3.msra.mxu1 %v41_v7  ;;  %v51_v35 = vld [vmem:[%s3864_s7 + $0x20] sm:$0xff]  ;;  %v3425_v36 = vld [vmem:[%s3863_s6 + $0x18] sm:$0xff]  ;;  %v548_v51 = vunpack.c.0.s8 %v547_v48  ;;  %v3461_v8 = vld [vmem:[%s3863_s6 + $0x8] sm:$0xff]  ;;  %s3248_s10 = smov 80   ;;  %s3249_s11 = smov 120   ;;  %vm2780_vm9 = vcmask 254976  }
   0xb   :  { %2953 = vmatprep.subr.mxu1 %v40_v9  ;;  %349 = vrot.lane.b32.xlu0 %v48_v14, %s3242_s19  ;;  %v3436_v41 = vld [vmem:[%s3865_s8] sm:$0x3f]  ;;  %s3250_s7 = smov 112   ;;  %s3251_s14 = smov 72  }
   0xc   :  { %2954 = vmatpush3.msra.mxu1 %v40_v9  ;;  %347 = vrot.lane.b32.xlu1 %v47_v16, %s3242_s19  ;;  %v163_v42 = vrot.slane %v3436_v41, %v3431_v40  ;;  %v342_v50 = vrot.slane %v3436_v41, %v341_v44  ;;  %v3443_v54 = vsub.s32 %v548_v51, %v3428_v39  ;;  %s3252_s16 = smov 104   ;;  %s3254_s28 = smov 64  }
   0xd   :  { %2947 = vmatmul.mubr.msk.f32.gmra.mxu1 %vm59_vm1, %v58_v10  ;;  %2955 = vmatprep.subr.mxu1 %v39_v11  ;;  %s3257_s12 = smov 16   ;;  %s3258_s13 = smov 24  }
   0xe   :  { %2956 = vmatpush3.msra.mxu1 %v39_v11  ;;  %2969 = vmatpush3.msra.mxu0 %v54_v32  ;;  %v3472_v11 = vld [vmem:[%s3863_s6] sm:$0xff] }
   0xf   :  { %2957 = vmatprep.subr.mxu1 %v38_v12  ;;  %2970 = vmatprep.subr.mxu0 %v53_v33 }
  0x10   :  { %2958 = vmatpush3.msra.mxu1 %v38_v12  ;;  %2971 = vmatpush3.msra.mxu0 %v53_v33 }
  0x11   :  { %2959 = vmatprep.subr.mxu1 %v37_v13  ;;  %2972 = vmatprep.subr.mxu0 %v52_v34 }
  0x12   :  { %2960 = vmatpush3.msra.mxu1 %v37_v13  ;;  %2973 = vmatpush3.msra.mxu0 %v52_v34  ;;  %v533_v13 = vld [vmem:[%s3861_s4 + $0x48] sm:$0xff] }
  0x13   :  { %2961 = vmatprep.subr.mxu1 %v36_v15  ;;  %2974 = vmatprep.subr.mxu0 %v51_v35 }
  0x14   :  { %2962 = vmatpush3.msra.mxu1 %v36_v15  ;;  %2975 = vmatpush3.msra.mxu0 %v51_v35 }
  0x15   :  { %2963 = vmatprep.subr.mxu1 %v35_v17  ;;  %2976 = vmatprep.subr.mxu0 %v3335_v5 }
  0x16   :  { %2964 = vmatpush3.msra.mxu1 %v35_v17  ;;  %2977 = vmatpush3.msra.mxu0 %v3335_v5  ;;  %v3453_v5 = vld [vmem:[%s3863_s6 + $0x10] sm:$0xff] }
  0x17   :  { %2987 = vmatprep.subr.mxu1 %v3239_v1  ;;  %2978 = vmatprep.subr.mxu0 %v3344_v6 }
  0x18   :  { %2979 = vmatpush3.msra.mxu0 %v3344_v6  ;;  %3168 = vset.pattern.permute.xlu0 %v3243_v37 }
  0x19   :  { %2980 = vmatprep.subr.mxu0 %v48_v14 }
  0x1a   :  { %2981 = vmatpush3.msra.mxu0 %v48_v14 }
  0x1b   :  { %2982 = vmatprep.subr.mxu0 %v47_v16 }
  0x1c   :  { %2983 = vmatpush3.msra.mxu0 %v47_v16 }
  0x1d   :  { %2998 = vmatprep.subr.mxu0 %v3425_v36 }
  0x74   :  { %v152_v18 = vpop.permute.xlu0 %151 }
  0x75   :  { %v354_v19 = vpop.permute.xlu1 %353 }
  0x78   :  { %v154_v23 = vpop.permute.xlu0 %153 }
  0x79   :  { %v352_v25 = vpop.permute.xlu1 %351 }
  0x7d   :  { %v350_v28 = vpop.permute.xlu0 %349 }
  0x7e   :  { %v348_v30 = vpop.permute.xlu1 %347 }
  0xc5   :  { %v135_v20 = vpop.f32.mrf.mxu1 }
  0xc6   :  { %v158_v21 = vsel %vm157_vm2, %v135_v20, %v152_v18  ;;  %v521_v18 = vld [vmem:[%s3858_s1 + $0x8] sm:$0xff] }
  0xc7   :  { %v2942_v22 = vpop.f32.mrf.mxu1  ;;  %2965 = vmatprep.mubr.msk.f32.mxu1 %vm164_vm3, %v158_v21  ;;  %v250_v21 = vsub.s32 4, %v3428_v39 }
  0xc9   :  { %v140_v24 = vpop.f32.mrf.mxu1  ;;  %v251_v22 = vrot.slane %v3436_v41, %v250_v21 }
  0xca   :  { %v159_v26 = vsel %vm157_vm2, %v140_v24, %v154_v23 }
  0xcb   :  { %v2945_v27 = vpop.f32.mrf.mxu1  ;;  %2966 = vmatmul.mubr.msk.f32.vlgmr.msra.gmra.mxu1 %vm164_vm3, %v159_v26 }
  0xcc   :  { %2988 = vmatpush3.msra.mxu1 %v354_v19  ;;  %2995 = vmatprep.mubr.msk.f32.mxu1 %vm3240_vm0, %v3239_v1 }
  0xcd   :  { %2989 = vmatprep.subr.mxu1 %v3239_v1  ;;  %v145_v29 = vpop.f32.mrf.mxu1 }
  0xce   :  { %2990 = vmatpush3.msra.mxu1 %v352_v25 }
  0xcf   :  { %2991 = vmatprep.subr.mxu1 %v3239_v1  ;;  %v2948_v31 = vpop.f32.mrf.mxu1 }
  0xd0   :  { %2992 = vmatpush3.msra.mxu1 %v350_v28 }
  0xd1   :  { %2993 = vmatprep.subr.mxu1 %v3239_v1 }
  0xd2   :  { %2994 = vmatpush3.msra.mxu1 %v348_v30 }
  0xd3   :  { %2996 = vmatmul.mubr.msk.f32.vlgmr.msra.gmra.mxu1 %vm157_vm2, %v145_v29  ;;  %3009 = vmatprep.subr.mxu1 %v3239_v1 }
  0xd4   :  { %3013 = vmatprep.mubr.msk.f32.mxu1 %vm3240_vm0, %v3239_v1 }
 0x18b   :  { %v2967_v43 = vpop.f32.mrf.mxu1 }
 0x18c   :  { %v243_v45 = vadd.f32 %v2967_v43, %v163_v42 }
 0x18d   :  { %v237_v46 = vpop.f32.mrf.mxu1 }
 0x18e   :  { %v238_v49 = vadd.f32 %v237_v46, %v163_v42 }
 0x190   :  { %3170 = vtanh.f32 %v238_v49 }
 0x191   :  { %3172 = vtanh.f32 %v243_v45 }
 0x193   :  { %v428_v52 = vpop.f32.mrf.mxu1 }
 0x194   :  { %v429_v53 = vadd.f32 %v428_v52, %v342_v50 }
 0x195   :  { %v2997_v55 = vpop.f32.mrf.mxu1 }
 0x196   :  { %vm432_vm4 = vcmp.ge.f32.partialorder %v429_v53, 0.0  ;;  %v433_v56 = vmul.f32 0.02, %v429_v53 }
 0x198   :  { %v434_v57 = vsel %vm432_vm4, %v429_v53, %v433_v56 }
 0x199   :  { %v690_v58 = vrot.slane %v434_v57, %v3443_v54 }
 0x19b   :  { %v698_v59 = vrot.slane %v690_v58, %v3443_v54  ;;  %v691_v60 = vcombine.high %v690_v58, %v690_v58 }
 0x19d   :  { %v3171_v61 = vpop.eup %3170  ;;  %v709_v62 = vrot.slane %v698_v59, %v3431_v40  ;;  %v705_v63 = vrot.slane %v691_v60, %v3443_v54  ;;  %v1259_v3 = vcombine.high %v698_v59, %v698_v59 }
 0x19e   :  { %v3173_v4 = vpop.eup %3172  ;;  %2984 = vmatprep.mubr.msk.f32.mxu0 %vm164_vm3, %v3171_v61 }
 0x19f   :  { %2985 = vmatmul.mubr.msk.f32.vlgmr.msra.gmra.mxu0 %vm164_vm3, %v3173_v4  ;;  %715 = vperm.xlu0 %3168, %v709_v62   ;;  %v713_v6 = vrot.slane %v705_v63, %v3431_v40  ;;  %v1260_v7 = vcombine.high %v705_v63, %v705_v63  ;;  %v1264_v10 = vrot.slane %v1259_v3, %v3431_v40 }
 0x1a0   :  { %2999 = vmatpush3.msra.mxu0 %v3425_v36  ;;  %3006 = vmatprep.mubr.msk.f32.mxu0 %vm157_vm2, %v3319_v2  ;;  %v532_v2 = vld [vmem:[%s3861_s4 + $0x40] sm:$0xff] }
 0x1a1   :  { %3000 = vmatprep.subr.mxu0 %v3453_v5  ;;  %719 = vperm.xlu1 %3169, %v713_v6   ;;  %v1268_v9 = vrot.slane %v1260_v7, %v3431_v40 }
 0x1a2   :  { %3001 = vmatpush3.msra.mxu0 %v3453_v5 }
 0x1a3   :  { %3002 = vmatprep.subr.mxu0 %v3461_v8  ;;  %1274 = vperm.xlu0 %3168, %v1268_v9  }
 0x1a4   :  { %3003 = vmatpush3.msra.mxu0 %v3461_v8 }
 0x1a5   :  { %3004 = vmatprep.subr.mxu0 %v3472_v11  ;;  %1270 = vperm.xlu1 %3169, %v1264_v10  }
 0x1a6   :  { %3005 = vmatpush3.msra.mxu0 %v3472_v11 }
 0x1a7   :  { %3007 = vmatmul.mubr.msk.f32.vlgmr.msra.gmra.mxu0 %vm157_vm2, %v3313_v0  ;;  %3016 = vmatprep.subr.mxu0 %v3239_v1 }
 0x1a8   :  { %3018 = vmatprep.mubr.msk.f32.mxu0 %vm3240_vm0, %v3239_v1 }
 0x21a   :  { %v716_v12 = vpop.permute.xlu0 %715 }
 0x21b   :  { %v722_v14 = vmul.f32 %v716_v12, %v532_v2 }
 0x21c   :  { %v720_v15 = vpop.permute.xlu1 %719 }
 0x21d   :  { %v724_v16 = vsel %vm666_vm5, %v722_v14, 0.0  ;;  %v723_v0 = vmul.f32 %v720_v15, %v533_v13  ;;  %v437_v13 = vsub.s32 1, %v3428_v39 }
 0x21f   :  { %v725_v17 = vsel %vm666_vm5, %v723_v0, 0.0 }
 0x220   :  { %v726_v19 = vadd.f32 %v725_v17, %v724_v16  ;;  %v438_v17 = vrot.slane %v3436_v41, %v437_v13  ;;  %v1275_v41 = vpop.permute.xlu0 %1274 }
 0x222   :  { %v3494_v20 = vadd.f32 %v726_v19, %v521_v18 }
 0x224   :  { %3010 = vmatpush3.msra.mxu1 %v3494_v20 }
 0x225   :  { %3011 = vmatprep.subr.mxu1 %v3239_v1 }
 0x25f   :  { %v2986_v23 = vpop.f32.mrf.mxu0 }
 0x260   :  { %v330_v24 = vadd.f32 %v2986_v23, %v251_v22  ;;  %v543_v23 = vld [vmem:[%s3861_s4 + $0x98] sm:$0xff] }
 0x261   :  { %v324_v25 = vpop.f32.mrf.mxu0 }
 0x262   :  { %vm334_vm6 = vcmp.ge.f32.partialorder %v330_v24, 0.0  ;;  %v336_v26 = vmul.f32 0.02, %v330_v24  ;;  %v325_v27 = vadd.f32 %v324_v25, %v251_v22  ;;  %v1271_v25 = vpop.permute.xlu1 %1270 }
 0x264   :  { %v338_v28 = vsel %vm334_vm6, %v330_v24, %v336_v26  ;;  %vm333_vm7 = vcmp.ge.f32.partialorder %v325_v27, 0.0  ;;  %v335_v29 = vmul.f32 0.02, %v325_v27  ;;  %v542_v24 = vld [vmem:[%s3861_s4 + $0x90] sm:$0xff] }
 0x265   :  { %v1122_v30 = vcombine.high %v338_v28, %v338_v28  ;;  %v1129_v31 = vrot.slane %v338_v28, %v3443_v54  ;;  %v1277_v26 = vmul.f32 %v1271_v25, %v542_v24  ;;  %v529_v25 = vld [vmem:[%s3861_s4 + $0x28] sm:$0xff] }
 0x266   :  { %v337_v32 = vsel %vm333_vm7, %v325_v27, %v335_v29 }
 0x267   :  { %v552_v33 = vrot.slane %v337_v32, %v3443_v54  ;;  %v1145_v34 = vrot.slane %v1129_v31, %v3443_v54  ;;  %v1137_v35 = vcombine.high %v1129_v31, %v1129_v31  ;;  %v1136_v43 = vrot.slane %v1122_v30, %v3443_v54  ;;  %v3008_v14 = vpop.f32.mrf.mxu0 }
 0x268   :  { %v545_v47 = vcombine.high %v337_v32, %v337_v32  ;;  %v1279_v29 = vsel %vm666_vm5, %v1277_v26, 0.0  ;;  %v3558_v32 = vadd.f32 %v3008_v14, %v438_v17  ;;  %v538_v14 = vld [vmem:[%s3861_s4 + $0x70] sm:$0xff] }
 0x269   :  { %v1174_v37 = vrot.slane %v1145_v34, %v3431_v40  ;;  %v1159_v38 = vrot.slane %v1137_v35, %v3443_v54  ;;  %v568_v42 = vrot.slane %v552_v33, %v3443_v54  ;;  %v1167_v45 = vcombine.high %v1145_v34, %v1145_v34  ;;  %v509_v19 = vpop.f32.mrf.mxu0 }
 0x26a   :  { %v560_v46 = vcombine.high %v552_v33, %v552_v33  ;;  %v1152_v49 = vrot.slane %v1136_v43, %v3443_v54  ;;  %v559_v55 = vrot.slane %v545_v47, %v3443_v54  ;;  %v1138_v58 = vcombine.high %v1136_v43, %v1136_v43  ;;  %v525_v43 = vld [vmem:[%s3861_s4 + $0x8] sm:$0xff] }
 0x26b   :  { %1204 = vperm.xlu1 %3169, %v1174_v37   ;;  %v1178_v44 = vrot.slane %v1159_v38, %v3431_v40  ;;  %v597_v48 = vrot.slane %v568_v42, %v3431_v40  ;;  %v1182_v50 = vrot.slane %v1167_v45, %v3431_v40  ;;  %v590_v53 = vcombine.high %v568_v42, %v568_v42  ;;  %v535_v45 = vld [vmem:[%s3861_s4 + $0x58] sm:$0xff] }
 0x26c   :  { %v582_v51 = vrot.slane %v560_v46, %v3443_v54  ;;  %v1190_v52 = vrot.slane %v1152_v49, %v3431_v40  ;;  %v1169_v57 = vcombine.high %v1159_v38, %v1159_v38  ;;  %v575_v60 = vrot.slane %v559_v55, %v3443_v54  ;;  %v524_v46 = vld [vmem:[%s3861_s4] sm:$0xff] }
 0x26d   :  { %1208 = vperm.xlu0 %3168, %v1178_v44   ;;  %v605_v59 = vrot.slane %v590_v53, %v3431_v40  ;;  %v1166_v62 = vrot.slane %v1138_v58, %v3443_v54  ;;  %v1168_v3 = vcombine.high %v1152_v49, %v1152_v49  ;;  %v561_v4 = vcombine.high %v559_v55, %v559_v55  ;;  %v536_v49 = vld [vmem:[%s3861_s4 + $0x60] sm:$0xff] }
 0x26e   :  { %v601_v56 = vrot.slane %v582_v51, %v3431_v40  ;;  %v1186_v61 = vrot.slane %v1169_v57, %v3431_v40  ;;  %v613_v63 = vrot.slane %v575_v60, %v3431_v40  ;;  %v592_v7 = vcombine.high %v582_v51, %v582_v51 }
 0x26f   :  { %627 = vperm.xlu1 %3169, %v597_v48   ;;  %v1194_v6 = vrot.slane %v1166_v62, %v3431_v40  ;;  %v1198_v9 = vrot.slane %v1168_v3, %v3431_v40  ;;  %v591_v10 = vcombine.high %v575_v60, %v575_v60  ;;  %v589_v2 = vrot.slane %v561_v4, %v3443_v54  ;;  %v534_v48 = vld [vmem:[%s3861_s4 + $0x50] sm:$0xff] }
 0x270   :  { %v609_v12 = vrot.slane %v592_v7, %v3431_v40  ;;  %v1170_v18 = vcombine.high %v1166_v62, %v1166_v62  ;;  %v3529_v21 = vadd.f32 %v509_v19, %v438_v17  ;;  %v3566_v33 = vmul.f32 0.35355338, %v3558_v32  ;;  %v539_v19 = vld [vmem:[%s3861_s4 + $0x78] sm:$0xff] }
 0x271   :  { %1212 = vperm.xlu0 %3168, %v1182_v50   ;;  %v621_v15 = vrot.slane %v591_v10, %v3431_v40  ;;  %v593_v16 = vcombine.high %v589_v2, %v589_v2  ;;  %v617_v0 = vrot.slane %v589_v2, %v3431_v40  ;;  %v528_v10 = vld [vmem:[%s3861_s4 + $0x20] sm:$0xff] }
 0x272   :  { %v1202_v22 = vrot.slane %v1170_v18, %v3431_v40  ;;  %v3544_v27 = vmul.f32 0.35355338, %v3529_v21 }
 0x273   :  { %1220 = vperm.xlu1 %3169, %v1190_v52   ;;  %v625_v54 = vrot.slane %v593_v16, %v3431_v40  ;;  %v1278_v40 = vmul.f32 %v1275_v41, %v543_v23  ;;  %v526_v52 = vld [vmem:[%s3861_s4 + $0x10] sm:$0xff] }
 0x274   :  { %v530_v41 = vld [vmem:[%s3861_s4 + $0x30] sm:$0xff] }
 0x275   :  { %631 = vperm.xlu0 %3168, %v601_v56   ;;  %v1280_v28 = vsel %vm666_vm5, %v1278_v40, 0.0  ;;  %v537_v56 = vld [vmem:[%s3861_s4 + $0x68] sm:$0xff] }
 0x276   :  { %v1281_v30 = vadd.f32 %v1280_v28, %v1279_v29 }
 0x277   :  { %635 = vperm.xlu1 %3169, %v605_v59  }
 0x279   :  { %1216 = vperm.xlu0 %3168, %v1186_v61  }
 0x27b   :  { %643 = vperm.xlu1 %3169, %v613_v63  }
 0x27d   :  { %1224 = vperm.xlu0 %3168, %v1194_v6  }
 0x27f   :  { %1228 = vperm.xlu1 %3169, %v1198_v9  }
 0x281   :  { %639 = vperm.xlu0 %3168, %v609_v12   ;;  %v527_v12 = vld [vmem:[%s3861_s4 + $0x18] sm:$0xff] }
 0x283   :  { %651 = vperm.xlu1 %3169, %v621_v15  }
 0x285   :  { %647 = vperm.xlu0 %3168, %v617_v0  }
 0x287   :  { %655 = vperm.xlu1 %3169, %v625_v54  }
 0x289   :  { %1232 = vperm.xlu0 %3168, %v1202_v22  }
 0x28b   :  { %810 = vrot.lane.b32.xlu1 %v3529_v21, %s3245_s24 }
 0x28d   :  { %731 = vrot.lane.b32.xlu0 %v3494_v20, %s3246_s29  ;;  %v523_v20 = vld [vmem:[%s3858_s1 + $0x18] sm:$0xff] }
 0x28e   :  { %v3556_v31 = vadd.f32 %v1281_v30, %v523_v20  ;;  %v531_v20 = vld [vmem:[%s3861_s4 + $0x38] sm:$0xff] }
 0x28f   :  { %889 = vrot.lane.b32.xlu1 %v3529_v21, %s3247_s30 }
 0x291   :  { %967 = vrot.lane.b32.xlu0 %v3529_v21, %s3248_s10 }
 0x293   :  { %887 = vrot.lane.b32.xlu1 %v3544_v27, %s3249_s11 }
 0x295   :  { %965 = vrot.lane.b32.xlu0 %v3544_v27, %s3250_s7 }
 0x297   :  { %1045 = vrot.lane.b32.xlu1 %v3529_v21, %s3251_s14 }
 0x299   :  { %1043 = vrot.lane.b32.xlu0 %v3544_v27, %s3252_s16 }
 0x29b   :  { %1286 = vrot.lane.b32.xlu1 %v3556_v31, %s3246_s29 }
 0x29d   :  { %1365 = vrot.lane.b32.xlu0 %v3558_v32, %s3245_s24 }
 0x29f   :  { %1444 = vrot.lane.b32.xlu1 %v3558_v32, %s3247_s30  ;;  %s3255_s30 = smov 48  }
 0x2a1   :  { %1442 = vrot.lane.b32.xlu0 %v3566_v33, %s3249_s11 }
 0x2a3   :  { %1522 = vrot.lane.b32.xlu1 %v3558_v32, %s3248_s10  ;;  %s3256_s10 = smov 40  }
 0x2a5   :  { %1600 = vrot.lane.b32.xlu0 %v3558_v32, %s3251_s14 }
 0x2a7   :  { %1520 = vrot.lane.b32.xlu1 %v3566_v33, %s3250_s7 }
 0x2a9   :  { %1598 = vrot.lane.b32.xlu0 %v3566_v33, %s3252_s16 }
 0x2e6   :  { %v1205_v34 = vpop.permute.xlu1 %1204 }
 0x2e7   :  { %v1235_v57 = vmul.f32 %v1205_v34, %v534_v48  ;;  %v541_v48 = vld [vmem:[%s3861_s4 + $0x88] sm:$0xff] }
 0x2e8   :  { %v1209_v35 = vpop.permute.xlu0 %1208 }
 0x2e9   :  { %v1236_v51 = vmul.f32 %v1209_v35, %v535_v45  ;;  %v1243_v6 = vsel %vm666_vm5, %v1235_v57, 0.0  ;;  %v540_v35 = vld [vmem:[%s3861_s4 + $0x80] sm:$0xff] }
 0x2ea   :  { %v628_v37 = vpop.permute.xlu1 %627 }
 0x2eb   :  { %v658_v55 = vmul.f32 %v628_v37, %v524_v46  ;;  %v1244_v62 = vsel %vm666_vm5, %v1236_v51, 0.0 }
 0x2ec   :  { %v1213_v38 = vpop.permute.xlu0 %1212  ;;  %v1245_v13 = vadd.f32 %v1244_v62, %v1243_v6 }
 0x2ed   :  { %v1237_v58 = vmul.f32 %v1213_v38, %v536_v49  ;;  %v667_v4 = vsel %vm666_vm5, %v658_v55, 0.0 }
 0x2ee   :  { %v1221_v42 = vpop.permute.xlu1 %1220 }
 0x2ef   :  { %v1246_v7 = vsel %vm666_vm5, %v1237_v58, 0.0  ;;  %v1239_v22 = vmul.f32 %v1221_v42, %v538_v14 }
 0x2f0   :  { %v632_v44 = vpop.permute.xlu0 %631  ;;  %v1247_v17 = vadd.f32 %v1246_v7, %v1245_v13 }
 0x2f1   :  { %v659_v50 = vmul.f32 %v632_v44, %v525_v43  ;;  %v1250_v42 = vsel %vm666_vm5, %v1239_v22, 0.0 }
 0x2f2   :  { %v636_v47 = vpop.permute.xlu1 %635 }
 0x2f3   :  { %v668_v60 = vsel %vm666_vm5, %v659_v50, 0.0  ;;  %v660_v61 = vmul.f32 %v636_v47, %v526_v52 }
 0x2f4   :  { %v1217_v53 = vpop.permute.xlu0 %1216  ;;  %v669_v9 = vadd.f32 %v668_v60, %v667_v4 }
 0x2f5   :  { %v1238_v63 = vmul.f32 %v1217_v53, %v537_v56  ;;  %v670_v15 = vsel %vm666_vm5, %v660_v61, 0.0 }
 0x2f6   :  { %v644_v59 = vpop.permute.xlu1 %643  ;;  %v671_v23 = vadd.f32 %v670_v15, %v669_v9 }
 0x2f7   :  { %v1248_v16 = vsel %vm666_vm5, %v1238_v63, 0.0  ;;  %v662_v18 = vmul.f32 %v644_v59, %v528_v10  ;;  %v520_v59 = vld [vmem:[%s3858_s1] sm:$0xff] }
 0x2f8   :  { %v1225_v3 = vpop.permute.xlu0 %1224  ;;  %v1249_v40 = vadd.f32 %v1248_v16, %v1247_v17 }
 0x2f9   :  { %v1240_v28 = vmul.f32 %v1225_v3, %v539_v19  ;;  %v674_v34 = vsel %vm666_vm5, %v662_v18, 0.0 }
 0x2fa   :  { %v1229_v2 = vpop.permute.xlu1 %1228  ;;  %v1251_v45 = vadd.f32 %v1250_v42, %v1249_v40 }
 0x2fb   :  { %v1252_v49 = vsel %vm666_vm5, %v1240_v28, 0.0  ;;  %v1241_v50 = vmul.f32 %v1229_v2, %v540_v35 }
 0x2fc   :  { %v640_v0 = vpop.permute.xlu0 %639  ;;  %v1253_v58 = vadd.f32 %v1252_v49, %v1251_v45 }
 0x2fd   :  { %v661_v54 = vmul.f32 %v640_v0, %v527_v12  ;;  %v1254_v61 = vsel %vm666_vm5, %v1241_v50, 0.0  ;;  %v522_v12 = vld [vmem:[%s3858_s1 + $0x10] sm:$0xff]  ;;  %s3253_s1 = smov 56  }
 0x2fe   :  { %v652_v24 = vpop.permute.xlu1 %651  ;;  %v1255_v7 = vadd.f32 %v1254_v61, %v1253_v58 }
 0x2ff   :  { %v672_v26 = vsel %vm666_vm5, %v661_v54, 0.0  ;;  %v664_v37 = vmul.f32 %v652_v24, %v530_v41 }
 0x300   :  { %v673_v29 = vadd.f32 %v672_v26, %v671_v23  ;;  %v648_v30 = vpop.permute.xlu0 %647 }
 0x301   :  { %v663_v38 = vmul.f32 %v648_v30, %v529_v25  ;;  %v678_v53 = vsel %vm666_vm5, %v664_v37, 0.0 }
 0x302   :  { %v675_v43 = vadd.f32 %v674_v34, %v673_v29  ;;  %v656_v44 = vpop.permute.xlu1 %655 }
 0x303   :  { %v676_v46 = vsel %vm666_vm5, %v663_v38, 0.0  ;;  %v665_v47 = vmul.f32 %v656_v44, %v531_v20 }
 0x304   :  { %v677_v51 = vadd.f32 %v676_v46, %v675_v43  ;;  %v1233_v52 = vpop.permute.xlu0 %1232 }
 0x305   :  { %v1242_v56 = vmul.f32 %v1233_v52, %v541_v48  ;;  %v680_v60 = vsel %vm666_vm5, %v665_v47, 0.0 }
 0x306   :  { %v679_v55 = vadd.f32 %v678_v53, %v677_v51  ;;  %v811_v57 = vpop.permute.xlu1 %810 }
 0x307   :  { %3017 = vmatpush3.xpose.msk.msra.mxu0 %vm666_vm5, %v811_v57  ;;  %v1256_v4 = vsel %vm666_vm5, %v1242_v56, 0.0 }
 0x308   :  { %v681_v62 = vadd.f32 %v680_v60, %v679_v55  ;;  %v732_v63 = vpop.permute.xlu0 %731  ;;  %3026 = vmatprep.subr.mxu0 %v3239_v1  ;;  %v1257_v2 = vadd.f32 %v1256_v4, %v1255_v7 }
 0x30a   :  { %v3641_v3 = vadd.f32 %v681_v62, %v520_v59  ;;  %3019 = vmatmul.mubr.msk.f32.vlgmr.msra.gmra.mxu0 %vm666_vm5, %v3544_v27  ;;  %v890_v6 = vpop.permute.xlu1 %889  ;;  %v3661_v15 = vadd.f32 %v1257_v2, %v522_v12 }
 0x30b   :  { %3028 = vmatprep.mubr.msk.f32.mxu0 %vm3240_vm0, %v3239_v1 }
 0x30c   :  { %v729_v9 = vmul.f32 0.8, %v3641_v3  ;;  %v968_v10 = vpop.permute.xlu0 %967  ;;  %3012 = vmatpush3.msra.mxu1 %v3641_v3  ;;  %v1284_v17 = vmul.f32 0.8, %v3661_v15  ;;  %v728_v26 = vmul.f32 0.2, %v3641_v3 }
 0x30d   :  { %3027 = vmatpush3.xpose.msk.msra.mxu0 %vm666_vm5, %v968_v10  ;;  %3021 = vmatprep.subr.mxu1 %v3239_v1  ;;  %v1283_v49 = vmul.f32 0.2, %v3661_v15 }
 0x30e   :  { %v734_v27 = vsel %vm666_vm5, %v729_v9, %v732_v63  ;;  %v888_v13 = vpop.permute.xlu1 %887  ;;  %3036 = vmatprep.subr.mxu0 %v3239_v1 }
 0x30f   :  { %3014 = vmatmul.mubr.msk.f32.vlgmr.msra.gmra.mxu1 %vm59_vm1, %v734_v27 }
 0x310   :  { %3022 = vmatpush3.xpose.msk.msra.mxu1 %vm666_vm5, %v890_v6  ;;  %v966_v14 = vpop.permute.xlu0 %965  ;;  %3023 = vmatprep.mubr.msk.f32.mxu1 %vm3240_vm0, %v3239_v1 }
 0x311   :  { %3029 = vmatmul.mubr.msk.f32.vlgmr.msra.gmra.mxu0 %vm666_vm5, %v966_v14  ;;  %3031 = vmatprep.subr.mxu1 %v3239_v1 }
 0x312   :  { %3037 = vmatpush3.msra.mxu0 %v3556_v31  ;;  %v1046_v16 = vpop.permute.xlu1 %1045  ;;  %3040 = vmatprep.mubr.msk.f32.mxu0 %vm3240_vm0, %v3239_v1 }
 0x313   :  { %3038 = vmatprep.subr.mxu0 %v3239_v1  ;;  %3024 = vmatmul.mubr.msk.f32.vlgmr.msra.gmra.mxu1 %vm666_vm5, %v888_v13 }
 0x314   :  { %3032 = vmatpush3.xpose.msk.msra.mxu1 %vm666_vm5, %v1046_v16  ;;  %3039 = vmatpush3.msra.mxu0 %v3661_v15  ;;  %v1044_v0 = vpop.permute.xlu0 %1043 }
 0x315   :  { %3033 = vmatprep.mubr.msk.f32.mxu1 %vm3240_vm0, %v3239_v1  ;;  %3043 = vmatprep.subr.mxu1 %v3239_v1 }
 0x316   :  { %v1287_v31 = vpop.permute.xlu1 %1286  ;;  %3048 = vmatprep.subr.mxu0 %v3239_v1 }
 0x317   :  { %v1289_v18 = vsel %vm666_vm5, %v1284_v17, %v1287_v31  ;;  %3034 = vmatmul.mubr.msk.f32.vlgmr.msra.gmra.mxu1 %vm666_vm5, %v1044_v0 }
 0x318   :  { %v1366_v19 = vpop.permute.xlu0 %1365  ;;  %3041 = vmatmul.mubr.msk.f32.vlgmr.msra.gmra.mxu0 %vm59_vm1, %v1289_v18  ;;  %3045 = vmatprep.mubr.msk.f32.mxu1 %vm3240_vm0, %v3239_v1 }
 0x319   :  { %3044 = vmatpush3.xpose.msk.msra.mxu1 %vm666_vm5, %v1366_v19  ;;  %3050 = vmatprep.mubr.msk.f32.mxu0 %vm3240_vm0, %v3239_v1 }
 0x31a   :  { %v1445_v54 = vpop.permute.xlu1 %1444  ;;  %3053 = vmatprep.subr.mxu1 %v3239_v1 }
 0x31b   :  { %3049 = vmatpush3.xpose.msk.msra.mxu0 %vm666_vm5, %v1445_v54 }
 0x31c   :  { %v1443_v22 = vpop.permute.xlu0 %1442  ;;  %3046 = vmatmul.mubr.msk.f32.vlgmr.msra.gmra.mxu1 %vm666_vm5, %v3566_v33  ;;  %3058 = vmatprep.subr.mxu0 %v3239_v1 }
 0x31d   :  { %3055 = vmatprep.mubr.msk.f32.mxu1 %vm3240_vm0, %v3239_v1 }
 0x31e   :  { %3051 = vmatmul.mubr.msk.f32.vlgmr.msra.gmra.mxu0 %vm666_vm5, %v1443_v22  ;;  %v1523_v23 = vpop.permute.xlu1 %1522 }
 0x31f   :  { %3054 = vmatpush3.xpose.msk.msra.mxu1 %vm666_vm5, %v1523_v23  ;;  %3060 = vmatprep.mubr.msk.f32.mxu0 %vm3240_vm0, %v3239_v1 }
 0x320   :  { %v1601_v41 = vpop.permute.xlu0 %1600  ;;  %3063 = vmatprep.subr.mxu1 %v3239_v1 }
 0x321   :  { %3059 = vmatpush3.xpose.msk.msra.mxu0 %vm666_vm5, %v1601_v41 }
 0x322   :  { %v1521_v24 = vpop.permute.xlu1 %1520  ;;  %3068 = vmatprep.subr.mxu0 %v3239_v1 }
 0x323   :  { %3056 = vmatmul.mubr.msk.f32.vlgmr.msra.gmra.mxu1 %vm666_vm5, %v1521_v24 }
 0x324   :  { %v1599_v33 = vpop.permute.xlu0 %1598  ;;  %3065 = vmatprep.mubr.msk.f32.mxu1 %vm3240_vm0, %v3239_v1 }
 0x325   :  { %3061 = vmatmul.mubr.msk.f32.vlgmr.msra.gmra.mxu0 %vm666_vm5, %v1599_v33 }
 0x326   :  { %3070 = vmatprep.mubr.msk.f32.mxu0 %vm3240_vm0, %v3239_v1 }
 0x3ca   :  { %v883_v25 = vpop.f32.mrf.mxu0 }
 0x3cc   :  { %v3020_v40 = vpop.f32.mrf.mxu0 }
 0x3cf   :  { %v804_v28 = vpop.f32.mrf.mxu1 }
 0x3d0   :  { %v808_v29 = vadd.f32 %v804_v28, %v728_v26 }
 0x3d1   :  { %v3015_v30 = vpop.f32.mrf.mxu1  ;;  %v1039_v20 = vpop.f32.mrf.mxu0 }
 0x3d2   :  { %v884_v34 = vadd.f32 %v883_v25, %v808_v29  ;;  %v1040_v44 = vadd.f32 %v1039_v20, %v808_v29 }
 0x3d3   :  { %v961_v35 = vpop.f32.mrf.mxu1  ;;  %v3030_v37 = vpop.f32.mrf.mxu0 }
 0x3d4   :  { %v3706_v38 = vadd.f32 %v961_v35, %v808_v29  ;;  %v1676_v42 = vsel %vm666_vm5, %v884_v34, -inf  ;;  %v1682_v52 = vsel %vm666_vm5, %v1040_v44, -inf }
 0x3d5   :  { %1677 = vmax.xlane.f32.xlu1 %v1676_v42  ;;  %v3025_v43 = vpop.f32.mrf.mxu1 }
 0x3d6   :  { %v1679_v45 = vsel %vm666_vm5, %v3706_v38, -inf }
 0x3d7   :  { %1680 = vmax.xlane.f32.xlu0 %v1679_v45  ;;  %v1117_v46 = vpop.f32.mrf.mxu1 }
 0x3d8   :  { %v3711_v47 = vadd.f32 %v1117_v46, %v808_v29  ;;  %v1359_v48 = vpop.f32.mrf.mxu0 }
 0x3d9   :  { %v3035_v50 = vpop.f32.mrf.mxu1  ;;  %v1363_v55 = vadd.f32 %v1359_v48, %v1283_v49 }
 0x3da   :  { %v3042_v51 = vpop.f32.mrf.mxu0  ;;  %v1685_v53 = vsel %vm666_vm5, %v3711_v47, -inf }
 0x3db   :  { %1683 = vmax.xlane.f32.xlu0 %v1682_v52  ;;  %1686 = vmax.xlane.f32.xlu1 %v1685_v53 }
 0x3dc   :  { %v1438_v56 = vpop.f32.mrf.mxu1 }
 0x3dd   :  { %v1439_v57 = vadd.f32 %v1438_v56, %v1363_v55 }
 0x3de   :  { %v3047_v58 = vpop.f32.mrf.mxu1  ;;  %v1516_v59 = vpop.f32.mrf.mxu0 }
 0x3df   :  { %v1517_v60 = vadd.f32 %v1516_v59, %v1363_v55  ;;  %v1688_v61 = vsel %vm666_vm5, %v1439_v57, -inf }
 0x3e0   :  { %1689 = vmax.xlane.f32.xlu0 %v1688_v61  ;;  %v3052_v62 = vpop.f32.mrf.mxu0 }
 0x3e1   :  { %v1691_v63 = vsel %vm666_vm5, %v1517_v60, -inf }
 0x3e2   :  { %1692 = vmax.xlane.f32.xlu1 %v1691_v63 }
 0x3e3   :  { %v1594_v3 = vpop.f32.mrf.mxu1 }
 0x3e4   :  { %v1595_v4 = vadd.f32 %v1594_v3, %v1363_v55 }
 0x3e5   :  { %v3057_v6 = vpop.f32.mrf.mxu1  ;;  %v1672_v7 = vpop.f32.mrf.mxu0 }
 0x3e6   :  { %v1673_v9 = vadd.f32 %v1672_v7, %v1363_v55  ;;  %v1694_v10 = vsel %vm666_vm5, %v1595_v4, -inf }
 0x3e7   :  { %v3062_v2 = vpop.f32.mrf.mxu0  ;;  %1695 = vmax.xlane.f32.xlu0 %v1694_v10 }
 0x3e8   :  { %v1697_v12 = vsel %vm666_vm5, %v1673_v9, -inf }
 0x3e9   :  { %1698 = vmax.xlane.f32.xlu1 %v1697_v12 }
 0x3fa   :  { %1840 = vrot.lane.b32.xlu1 %v3529_v21, %s3253_s1 }
 0x3fd   :  { %1764 = vrot.lane.b32.xlu0 %v3529_v21, %s3254_s28 }
 0x3fe   :  { %1916 = vrot.lane.b32.xlu1 %v3529_v21, %s3255_s30 }
 0x401   :  { %1992 = vrot.lane.b32.xlu0 %v3529_v21, %s3256_s10 }
 0x402   :  { %2084 = vrot.lane.b32.xlu1 %v3558_v32, %s3254_s28 }
 0x405   :  { %2160 = vrot.lane.b32.xlu0 %v3558_v32, %s3253_s1 }
 0x45e   :  { %v1678_v27 = vpop.xlane.xlu1 %1677 }
 0x45f   :  { %v1700_v13 = vsub.f32 %v884_v34, %v1678_v27 }
 0x460   :  { %v1681_v14 = vpop.xlane.xlu0 %1680 }
 0x461   :  { %v1708_v15 = vmul.f32 1.442695, %v1700_v13  ;;  %v1701_v19 = vsub.f32 %v3706_v38, %v1681_v14 }
 0x463   :  { %3174 = vpow2.f32 %v1708_v15  ;;  %v1710_v41 = vmul.f32 1.442695, %v1701_v19 }
 0x464   :  { %v1684_v16 = vpop.xlane.xlu0 %1683  ;;  %v1687_v31 = vpop.xlane.xlu1 %1686 }
 0x465   :  { %v1702_v0 = vsub.f32 %v1040_v44, %v1684_v16  ;;  %v1703_v28 = vsub.f32 %v3711_v47, %v1687_v31 }
 0x467   :  { %v1712_v17 = vmul.f32 1.442695, %v1702_v0  ;;  %v1714_v38 = vmul.f32 1.442695, %v1703_v28 }
 0x469   :  { %3176 = vpow2.f32 %v1712_v17  ;;  %v1690_v18 = vpop.xlane.xlu0 %1689 }
 0x46a   :  { %v1704_v54 = vsub.f32 %v1439_v57, %v1690_v18 }
 0x46b   :  { %v1693_v21 = vpop.xlane.xlu1 %1692 }
 0x46c   :  { %v1716_v22 = vmul.f32 1.442695, %v1704_v54  ;;  %v1705_v23 = vsub.f32 %v1517_v60, %v1693_v21  ;;  %v3206_v21 = vld [vmem:[%s3859_s2] sm:$0xff] }
 0x46e   :  { %3178 = vpow2.f32 %v1716_v22  ;;  %v1718_v24 = vmul.f32 1.442695, %v1705_v23 }
 0x470   :  { %v3175_v33 = vpop.eup %3174  ;;  %3180 = vpow2.f32 %v1718_v24  ;;  %v1696_v25 = vpop.xlane.xlu0 %1695 }
 0x471   :  { %v1706_v40 = vsub.f32 %v1595_v4, %v1696_v25  ;;  %v1724_v26 = vsel %vm666_vm5, %v3175_v33, 0.0  ;;  %3182 = vpow2.f32 %v1710_v41 }
 0x472   :  { %1725 = vadd.xlane.f32.xlu0 %v1724_v26  ;;  %v1699_v29 = vpop.xlane.xlu1 %1698 }
 0x473   :  { %v1720_v30 = vmul.f32 1.442695, %v1706_v40  ;;  %v1707_v20 = vsub.f32 %v1673_v9, %v1699_v29 }
 0x474   :  { %v1765_v34 = vpop.permute.xlu0 %1764 }
 0x475   :  { %3184 = vpow2.f32 %v1720_v30  ;;  %v1722_v35 = vmul.f32 1.442695, %v1707_v20  ;;  %3064 = vmatpush3.msra.mxu1 %v1765_v34 }
 0x476   :  { %v3177_v37 = vpop.eup %3176  ;;  %v1841_v42 = vpop.permute.xlu1 %1840  ;;  %3073 = vmatprep.subr.mxu1 %v3239_v1 }
 0x477   :  { %3186 = vpow2.f32 %v1722_v35  ;;  %3069 = vmatpush3.msra.mxu0 %v1841_v42  ;;  %v1730_v43 = vsel %vm666_vm5, %v3177_v37, 0.0 }
 0x478   :  { %1731 = vadd.xlane.f32.xlu0 %v1730_v43  ;;  %3078 = vmatprep.subr.mxu0 %v3239_v1  ;;  %3188 = vpow2.f32 %v1714_v38  ;;  %v1993_v57 = vpop.permute.xlu0 %1992 }
 0x47a   :  { %v1917_v60 = vpop.permute.xlu1 %1916 }
 0x47b   :  { %v3179_v44 = vpop.eup %3178 }
 0x47c   :  { %v1736_v45 = vsel %vm666_vm5, %v3179_v44, 0.0  ;;  %v2161_v58 = vpop.permute.xlu0 %2160 }
 0x47d   :  { %v3738_v46 = vpop.eup %3180  ;;  %1737 = vadd.xlane.f32.xlu0 %v1736_v45 }
 0x47e   :  { %v1739_v47 = vsel %vm666_vm5, %v3738_v46, 0.0  ;;  %v3183_v48 = vpop.eup %3182  ;;  %v2085_v62 = vpop.permute.xlu1 %2084 }
 0x47f   :  { %1740 = vadd.xlane.f32.xlu1 %v1739_v47  ;;  %v1727_v50 = vsel %vm666_vm5, %v3183_v48, 0.0  ;;  %v3210_v47 = vld [vmem:[%s3862_s5 + $0x18] sm:$0xff] }
 0x482   :  { %v3185_v49 = vpop.eup %3184 }
 0x483   :  { %1728 = vadd.xlane.f32.xlu1 %v1727_v50  ;;  %v1742_v51 = vsel %vm666_vm5, %v3185_v49, 0.0  ;;  %v3213_v50 = vld [vmem:[%s3862_s5 + $0x10] sm:$0xff] }
 0x484   :  { %v3744_v52 = vpop.eup %3186  ;;  %1743 = vadd.xlane.f32.xlu0 %v1742_v51  ;;  %v3214_v51 = vld [vmem:[%s3862_s5] sm:$0xff] }
 0x485   :  { %v1745_v53 = vsel %vm666_vm5, %v3744_v52, 0.0  ;;  %v3189_v55 = vpop.eup %3188 }
 0x486   :  { %v1733_v56 = vsel %vm666_vm5, %v3189_v55, 0.0 }
 0x487   :  { %1746 = vadd.xlane.f32.xlu1 %v1745_v53 }
 0x48b   :  { %1734 = vadd.xlane.f32.xlu1 %v1733_v56 }
 0x49a   :  { %2312 = vrot.lane.b32.xlu0 %v3558_v32, %s3256_s10 }
 0x49c   :  { %2236 = vrot.lane.b32.xlu1 %v3558_v32, %s3255_s30 }
 0x49e   :  { %2415 = vrot.lane.b32.xlu0 %v3453_v5, %s3241_s15 }
 0x4a0   :  { %2417 = vrot.lane.b32.xlu1 %v3425_v36, %s3241_s15 }
 0x4a2   :  { %2413 = vrot.lane.b32.xlu0 %v3461_v8, %s3241_s15 }
 0x4fb   :  { %v1726_v59 = vpop.xlane.xlu0 %1725 }
 0x4fc   :  { %3190 = vrcp.f32 %v1726_v59 }
 0x501   :  { %v1732_v61 = vpop.xlane.xlu0 %1731 }
 0x502   :  { %3192 = vrcp.f32 %v1732_v61 }
 0x506   :  { %v1738_v63 = vpop.xlane.xlu0 %1737 }
 0x507   :  { %3194 = vrcp.f32 %v1738_v63 }
 0x508   :  { %v1741_v32 = vpop.xlane.xlu1 %1740 }
 0x509   :  { %v3191_v3 = vpop.eup %3190 }
 0x50a   :  { %v1756_v4 = vmul.f32 %v3191_v3, %v3175_v33 }
 0x50c   :  { %3066 = vmatmul.mubr.msk.f32.vlgmr.msra.gmra.mxu1 %vm666_vm5, %v1756_v4  ;;  %v1729_v5 = vpop.xlane.xlu1 %1728  ;;  %v2405_v4 = vsub.s32 3, %v3428_v39 }
 0x50d   :  { %3074 = vmatpush3.msra.mxu1 %v1917_v60  ;;  %3196 = vrcp.f32 %v1729_v5  ;;  %v1744_v36 = vpop.xlane.xlu0 %1743  ;;  %3075 = vmatprep.mubr.msk.f32.mxu1 %vm3240_vm0, %v3239_v1  ;;  %v3215_v5 = vld [vmem:[%s3865_s8] sm:$0x3f] }
 0x50e   :  { %3198 = vrcp.f32 %v1744_v36  ;;  %3083 = vmatprep.subr.mxu1 %v3239_v1  ;;  %v2406_v36 = vrot.slane %v3215_v5, %v2405_v4 }
 0x50f   :  { %v3193_v8 = vpop.eup %3192 }
 0x510   :  { %v1747_v6 = vpop.xlane.xlu1 %1746  ;;  %v1758_v7 = vmul.f32 %v3193_v8, %v3177_v37 }
 0x511   :  { %v2313_v19 = vpop.permute.xlu0 %2312 }
 0x512   :  { %3076 = vmatmul.mubr.msk.f32.vlgmr.msra.gmra.mxu1 %vm666_vm5, %v1758_v7 }
 0x513   :  { %3084 = vmatpush3.msra.mxu1 %v2085_v62  ;;  %3085 = vmatprep.mubr.msk.f32.mxu1 %vm3240_vm0, %v3239_v1 }
 0x514   :  { %v3195_v9 = vpop.eup %3194  ;;  %v1735_v10 = vpop.xlane.xlu1 %1734  ;;  %3093 = vmatprep.subr.mxu1 %v3239_v1 }
 0x515   :  { %3200 = vrcp.f32 %v1735_v10  ;;  %v1760_v2 = vmul.f32 %v3195_v9, %v3179_v44  ;;  %v2416_v24 = vpop.permute.xlu0 %2415  ;;  %v3207_v44 = vld [vmem:[%s3862_s5 + $0x38] sm:$0xff] }
 0x516   :  { %3202 = vrcp.f32 %v1741_v32 }
 0x517   :  { %3086 = vmatmul.mubr.msk.f32.vlgmr.msra.gmra.mxu1 %vm666_vm5, %v1760_v2  ;;  %3204 = vrcp.f32 %v1747_v6 }
 0x518   :  { %v2237_v12 = vpop.permute.xlu1 %2236  ;;  %3095 = vmatprep.mubr.msk.f32.mxu1 %vm3240_vm0, %v3239_v1 }
 0x519   :  { %3094 = vmatpush3.msra.mxu1 %v2237_v12  ;;  %v2414_v40 = vpop.permute.xlu0 %2413 }
 0x51a   :  { %v3197_v27 = vpop.eup %3196 }
 0x51b   :  { %v3199_v13 = vpop.eup %3198  ;;  %v1757_v14 = vmul.f32 %v3197_v27, %v3183_v48  ;;  %v3211_v48 = vld [vmem:[%s3862_s5 + $0x20] sm:$0xff]  ;;  %v3216_v27 = vld [vmem:[%s3859_s2 + $0x8] sm:$0xff] }
 0x51c   :  { %v1762_v15 = vmul.f32 %v3199_v13, %v3185_v49  ;;  %v2418_v22 = vpop.permute.xlu1 %2417  ;;  %v3212_v49 = vld [vmem:[%s3862_s5 + $0x8] sm:$0xff] }
 0x51d   :  { %3071 = vmatmul.mubr.msk.f32.vlgmr.msra.gmra.mxu0 %vm666_vm5, %v1757_v14  ;;  %3103 = vmatprep.subr.mxu1 %v2418_v22 }
 0x51e   :  { %3079 = vmatpush3.msra.mxu0 %v1993_v57  ;;  %3096 = vmatmul.mubr.msk.f32.vlgmr.msra.gmra.mxu1 %vm666_vm5, %v1762_v15 }
 0x51f   :  { %3080 = vmatprep.mubr.msk.f32.mxu0 %vm3240_vm0, %v3239_v1  ;;  %3088 = vmatprep.subr.mxu0 %v3239_v1 }
 0x520   :  { %3104 = vmatpush3.msra.mxu1 %v2418_v22  ;;  %v2591_v22 = vsub.s32 2, %v3428_v39 }
 0x521   :  { %3105 = vmatprep.subr.mxu1 %v2416_v24 }
 0x522   :  { %v3201_v16 = vpop.eup %3200  ;;  %3106 = vmatpush3.msra.mxu1 %v2416_v24 }
 0x523   :  { %v1759_v0 = vmul.f32 %v3201_v16, %v3189_v55  ;;  %v3203_v17 = vpop.eup %3202  ;;  %3107 = vmatprep.subr.mxu1 %v2414_v40 }
 0x524   :  { %v1761_v31 = vmul.f32 %v3203_v17, %v3738_v46  ;;  %v3205_v18 = vpop.eup %3204  ;;  %3108 = vmatpush3.msra.mxu1 %v2414_v40  ;;  %v3208_v46 = vld [vmem:[%s3862_s5 + $0x28] sm:$0xff]  ;;  %v2706_v40 = vld [vmem:[%s3860_s3] sm:$0x3] }
 0x525   :  { %3081 = vmatmul.mubr.msk.f32.vlgmr.msra.gmra.mxu0 %vm666_vm5, %v1759_v0  ;;  %v1763_v54 = vmul.f32 %v3205_v18, %v3744_v52 }
 0x526   :  { %3089 = vmatpush3.msra.mxu0 %v2161_v58  ;;  %3090 = vmatprep.mubr.msk.f32.mxu0 %vm3240_vm0, %v3239_v1 }
 0x527   :  { %3098 = vmatprep.subr.mxu0 %v3239_v1 }
 0x529   :  { %3091 = vmatmul.mubr.msk.f32.vlgmr.msra.gmra.mxu0 %vm666_vm5, %v1761_v31 }
 0x52a   :  { %3099 = vmatpush3.msra.mxu0 %v2313_v19  ;;  %3100 = vmatprep.mubr.msk.f32.mxu0 %vm3240_vm0, %v3239_v1 }
 0x52d   :  { %3101 = vmatmul.mubr.msk.f32.vlgmr.msra.gmra.mxu0 %vm666_vm5, %v1763_v54 }
 0x52e   :  { %3118 = vmatprep.mubr.msk.f32.mxu0 %vm59_vm1, %v3206_v21 }
 0x5cc   :  { %v1836_v23 = vpop.f32.mrf.mxu1 }
 0x5ce   :  { %v3067_v41 = vpop.f32.mrf.mxu1 }
 0x5d2   :  { %v1988_v33 = vpop.f32.mrf.mxu1 }
 0x5d4   :  { %v3077_v25 = vpop.f32.mrf.mxu1 }
 0x5d7   :  { %v2156_v26 = vpop.f32.mrf.mxu1 }
 0x5d9   :  { %v3087_v28 = vpop.f32.mrf.mxu1 }
 0x5dd   :  { %v1912_v29 = vpop.f32.mrf.mxu0 }
 0x5de   :  { %2069 = vrot.lane.b32.xlu1 %v1912_v29, %s3246_s29  ;;  %v2308_v30 = vpop.f32.mrf.mxu1 }
 0x5df   :  { %v3072_v20 = vpop.f32.mrf.mxu0 }
 0x5e0   :  { %v3097_v34 = vpop.f32.mrf.mxu1 }
 0x5e2   :  { %2073 = vrot.lane.b32.xlu1 %v1988_v33, %s3257_s12 }
 0x5e5   :  { %v2064_v35 = vpop.f32.mrf.mxu0 }
 0x5e6   :  { %2077 = vrot.lane.b32.xlu1 %v2064_v35, %s3258_s13 }
 0x5e7   :  { %v3082_v37 = vpop.f32.mrf.mxu0 }
 0x5e9   :  { %v2232_v38 = vpop.f32.mrf.mxu0 }
 0x5ea   :  { %2389 = vrot.lane.b32.xlu0 %v2232_v38, %s3246_s29  ;;  %2411 = vrot.lane.b32.xlu1 %v3472_v11, %s3241_s15  ;;  %v3209_v11 = vld [vmem:[%s3862_s5 + $0x30] sm:$0xff] }
 0x5eb   :  { %v3092_v42 = vpop.f32.mrf.mxu0 }
 0x5ed   :  { %v2384_v43 = vpop.f32.mrf.mxu0 }
 0x5ee   :  { %2393 = vrot.lane.b32.xlu0 %v2308_v30, %s3257_s12  ;;  %2615 = vrot.lane.b32.xlu1 %v3207_v44, %s3254_s28 }
 0x5ef   :  { %v3102_v45 = vpop.f32.mrf.mxu0 }
 0x5f2   :  { %2397 = vrot.lane.b32.xlu0 %v2384_v43, %s3258_s13  ;;  %2611 = vrot.lane.b32.xlu1 %v3208_v46, %s3254_s28 }
 0x5f6   :  { %2613 = vrot.lane.b32.xlu0 %v3209_v11, %s3254_s28  ;;  %2607 = vrot.lane.b32.xlu1 %v3210_v47, %s3254_s28 }
 0x5fa   :  { %2609 = vrot.lane.b32.xlu0 %v3211_v48, %s3254_s28  ;;  %2603 = vrot.lane.b32.xlu1 %v3212_v49, %s3254_s28 }
 0x5fe   :  { %2605 = vrot.lane.b32.xlu0 %v3213_v50, %s3254_s28  ;;  %2601 = vrot.lane.b32.xlu1 %v3214_v51, %s3254_s28 }
 0x650   :  { %v2070_v52 = vpop.permute.xlu1 %2069 }
 0x651   :  { %v2080_v55 = vsel %vm666_vm5, %v1836_v23, %v2070_v52  ;;  %v2592_v23 = vrot.slane %v3215_v5, %v2591_v22 }
 0x654   :  { %v2074_v53 = vpop.permute.xlu1 %2073 }
 0x655   :  { %v2081_v56 = vsel %vm59_vm1, %v2080_v55, %v2074_v53 }
 0x658   :  { %v2078_v57 = vpop.permute.xlu1 %2077 }
 0x659   :  { %v2083_v58 = vsel %vm2082_vm8, %v2081_v56, %v2078_v57 }
 0x65a   :  { %3111 = vmatprep.mubr.msk.f32.mxu1 %vm157_vm2, %v2083_v58 }
 0x65c   :  { %v2390_v59 = vpop.permute.xlu0 %2389  ;;  %v2412_v60 = vpop.permute.xlu1 %2411 }
 0x65d   :  { %3109 = vmatprep.subr.mxu1 %v2412_v60  ;;  %v2400_v62 = vsel %vm666_vm5, %v2156_v26, %v2390_v59 }
 0x65e   :  { %3110 = vmatpush3.msra.mxu1 %v2412_v60 }
 0x65f   :  { %3140 = vmatprep.subr.mxu1 %v3239_v1 }
 0x660   :  { %v2394_v61 = vpop.permute.xlu0 %2393  ;;  %v2616_v8 = vpop.permute.xlu1 %2615 }
 0x661   :  { %v2401_v63 = vsel %vm59_vm1, %v2400_v62, %v2394_v61 }
 0x664   :  { %v2398_v32 = vpop.permute.xlu0 %2397  ;;  %v2612_v12 = vpop.permute.xlu1 %2611 }
 0x665   :  { %v2402_v3 = vsel %vm2082_vm8, %v2401_v63, %v2398_v32 }
 0x666   :  { %3112 = vmatmul.mubr.msk.f32.vlgmr.msra.gmra.mxu1 %vm157_vm2, %v2402_v3 }
 0x667   :  { %3144 = vmatprep.mubr.msk.f32.mxu1 %vm3240_vm0, %v3239_v1 }
 0x668   :  { %v2614_v2 = vpop.permute.xlu0 %2613  ;;  %v2608_v14 = vpop.permute.xlu1 %2607 }
 0x66c   :  { %v2610_v13 = vpop.permute.xlu0 %2609  ;;  %v2604_v16 = vpop.permute.xlu1 %2603 }
 0x670   :  { %v2606_v15 = vpop.permute.xlu0 %2605  ;;  %v2602_v0 = vpop.permute.xlu1 %2601 }
 0x726   :  { %v3113_v6 = vpop.f32.mrf.mxu1 }
 0x727   :  { %v2501_v7 = vadd.f32 %v3113_v6, %v2406_v36 }
 0x728   :  { %v2495_v9 = vpop.f32.mrf.mxu1 }
 0x729   :  { %v2496_v10 = vadd.f32 %v2495_v9, %v2406_v36  ;;  %3114 = vmatprep.subr.mxu0 %v2501_v7 }
 0x72a   :  { %3115 = vmatpush3.msra.mxu0 %v2501_v7 }
 0x72b   :  { %2581 = vrot.lane.b32.xlu0 %v2496_v10, %s3241_s15  ;;  %3116 = vmatprep.subr.mxu0 %v2496_v10 }
 0x72c   :  { %3117 = vmatpush3.msra.mxu0 %v2496_v10 }
 0x72d   :  { %3119 = vmatmul.mubr.msk.f32.vlgmr.msra.gmra.mxu0 %vm59_vm1, %v3216_v27  ;;  %3121 = vmatprep.subr.mxu0 %v2616_v8 }
 0x72e   :  { %3122 = vmatpush3.msra.mxu0 %v2616_v8 }
 0x72f   :  { %2583 = vrot.lane.b32.xlu0 %v2501_v7, %s3241_s15  ;;  %3123 = vmatprep.subr.mxu0 %v2614_v2  ;;  %s3259_s15 = smov [#allocation2]  }
 0x730   :  { %3124 = vmatpush3.msra.mxu0 %v2614_v2  ;;  %s2788_s30 = sshll.u32 %s3259_s15, 4  ;;  %s2789_s30 = int_to_ptr.vmem [resolvable:$true] %s2788_s30 }
 0x731   :  { %3125 = vmatprep.subr.mxu0 %v2612_v12  ;;  %s3217_s10 = scalar_lea.vmem %s2789_s30, 32  ;;  %p3222_p1 = scmp.lt.s32.totalorder %s2789_s30, %s2789_s30 }
 0x732   :  { %3126 = vmatpush3.msra.mxu0 %v2612_v12  ;;  %p3218_p0 = scmp.ne.s32.totalorder %s2789_s30, %s3217_s10  ;;  %p3223_p2 = scmp.lt.s32.totalorder %s3217_s10, %s3217_s10 }
 0x733   :  { %3127 = vmatprep.subr.mxu0 %v2610_v13 }
 0x734   :  { %3128 = vmatpush3.msra.mxu0 %v2610_v13  ;;  %p3224_p3 = por %p3223_p2, %p3222_p1 }
 0x735   :  { %3129 = vmatprep.subr.mxu0 %v2608_v14 }
 0x736   :  { %3130 = vmatpush3.msra.mxu0 %v2608_v14  ;;  %p3225_p4 = pnand %p3224_p3, %p3218_p0 }
 0x737   :  { %3131 = vmatprep.subr.mxu0 %v2606_v15 }
 0x738   :  { %3132 = vmatpush3.msra.mxu0 %v2606_v15 }
 0x739   :  { %3133 = vmatprep.subr.mxu0 %v2604_v16 }
 0x73a   :  { %3134 = vmatpush3.msra.mxu0 %v2604_v16 }
 0x73b   :  { %3135 = vmatprep.subr.mxu0 %v2602_v0 }
 0x73c   :  { %3136 = vmatpush3.msra.mxu0 %v2602_v0 }
 0x79d   :  { %v2582_v17 = vpop.permute.xlu0 %2581 }
 0x7a1   :  { %v2584_v19 = vpop.permute.xlu0 %2583 }
 0x7ed   :  { %v3120_v31 = vpop.f32.mrf.mxu0 }
 0x7ee   :  { %v2588_v21 = vsel %vm157_vm2, %v3120_v31, %v2584_v19 }
 0x7ef   :  { %v2570_v18 = vpop.f32.mrf.mxu0 }
 0x7f0   :  { %v2587_v54 = vsel %vm157_vm2, %v2570_v18, %v2582_v17 }
 0x7f1   :  { %3137 = vmatprep.mubr.msk.f32.mxu0 %vm164_vm3, %v2587_v54 }
 0x7f2   :  { %3138 = vmatmul.mubr.msk.f32.vlgmr.msra.gmra.mxu0 %vm164_vm3, %v2588_v21 }
 0x8b2   :  { %v3139_v41 = vpop.f32.mrf.mxu0 }
 0x8b3   :  { %v2703_v24 = vadd.f32 %v3139_v41, %v2592_v23 }
 0x8b4   :  { %v2697_v33 = vpop.f32.mrf.mxu0 }
 0x8b5   :  { %v2698_v25 = vadd.f32 %v2697_v33, %v2592_v23  ;;  %3141 = vmatpush3.msra.mxu1 %v2703_v24 }
 0x8b6   :  { %3142 = vmatprep.subr.mxu1 %v3239_v1 }
 0x8b7   :  { %3143 = vmatpush3.msra.mxu1 %v2698_v25 }
 0x8b8   :  { %3145 = vmatmul.mubr.msk.f32.vlgmr.msra.gmra.mxu1 %vm59_vm1, %v2706_v40 }
 0x978   :  { %v2776_v39 = vpop.f32.mrf.mxu1 }
 0x979   :  { %2781 = vst.msk [vmem:[#allocation2] sm:$0x3] %vm2780_vm9, %v2776_v39 }
 0x97a   :  { %v3146_v26 = vpop.f32.mrf.mxu1 }
 0x97b   :  { %3228 = shalt.err (!%p3225_p4)
}
 0x97c   :  { %2791 = dma.vmem_to_hbm [thread:$0]  %s2789_s30, 32, %s3866_s9, [#allocation3]  }
 0x97d   :  { %3237 = dma.done.wait [#allocation3], 32  }
 0x97e   :  { %3238 = vsyncadd [#allocation3], 4294967264 }
 0x97f   :  { %2795 = vsyncpa [#allocation3], 1 }

</bundles_post_ra>
